<compile_context>
chip_gen: v6e
topology: v6e:2x2x1
jax: 0.10.0
libtpu: 0.0.40
codegen_flags: <defaults>
</compile_context>

<pallas_src>
import jax
import jax.numpy as jnp
from jax import lax
from jax.experimental import pallas as pl
from jax.experimental.pallas import tpu as pltpu

NEG_INF = -1e30


# ---------------------------------------------------------------------------
# VMEM budgeting (generation-aware).
# ---------------------------------------------------------------------------
def _vmem_capacity_bytes():
    try:
        info = pltpu.get_tpu_info()
        for attr in ("vmem_capacity_bytes", "vmem_bytes", "vmem_size_bytes"):
            v = getattr(info, attr, None)
            if v:
                return int(v)
    except Exception:
        pass
    return 64 << 20  # conservative fallback (v7x per-TensorCore physical)


def _vmem_limit_bytes():
    return int(_vmem_capacity_bytes() * 0.85)  # headroom for compiler scratch


def _fused_vmem_bytes(n, fp, num_layers=3):
    # adj int8 + e/p f32 transients + x/h/out f32 + hb bf16 + params
    return (n * n * (1 + 4 + 4)
            + n * fp * (4 + 4 + 2 + 4)
            + num_layers * fp * fp * 2
            + (1 << 20))


def _tiled_vmem_bytes(n_pad, fp, tile):
    resident = n_pad * fp * 2 + n_pad * 8 + fp * fp * 2 + fp * 8   # h, a_*, w
    per_step = (tile * n_pad * (3 * 1 + 2 * 4)    # adj x3 buffers, e, p
                + tile * fp * (2 * 4 + 2)          # out double buf + p cast
                + tile * 8)                        # a_dst
    return resident + per_step + (2 << 20)


# ---------------------------------------------------------------------------
# Fused kernel: all GAT layers in one pallas_call (small/medium N).
# ---------------------------------------------------------------------------
def _gnn_fused_kernel(x_ref, adj_ref, w_ref, asrc_ref, adst_ref, bias_ref,
                      out_ref):
    # x:    (N, FP)      f32, features zero-padded to FP (multiple of 128)
    # adj:  (N, N)       int8, adj[i, j] != 0 iff edge j -> i (self loops incl.)
    # w:    (L, FP, FP)  bf16 padded GATConv.lin weights
    # asrc: (L, 1, FP)   bf16 attention vector, source term
    # adst: (L, FP, 1)   bf16 attention vector, destination term
    # bias: (L, 1, FP)   f32
    num_layers = w_ref.shape[0]
    x = x_ref[...]                                 # (N, FP) f32
    for l in range(num_layers):                    # static unroll (L = 3)
        h = jnp.dot(x.astype(jnp.bfloat16), w_ref[l],
                    preferred_element_type=jnp.float32)              # (N, FP)
        hb = h.astype(jnp.bfloat16)                # cast once, reused 3x
        a_dst = jnp.dot(hb, adst_ref[l],
                        preferred_element_type=jnp.float32)          # (N, 1)
        a_src = lax.dot_general(asrc_ref[l], hb,
                                (((1,), (1,)), ((), ())),
                                preferred_element_type=jnp.float32)  # (1, N)
        e = a_dst + a_src                                            # (N, N)
        e = jnp.where(e > 0, e, 0.2 * e)                             # LeakyReLU
        # mask re-derived per layer (cheap compare) instead of a hoisted
        # second N^2 buffer kept live for the whole kernel.
        e = jnp.where(adj_ref[...] != 0, e, NEG_INF)
        # masked entries underflow to exactly 0 in exp (every row has a
        # self loop, so the row max is finite) -> no second mask select.
        p = jnp.exp(e - jnp.max(e, axis=-1, keepdims=True))
        inv = pl.reciprocal(jnp.sum(p, axis=-1, keepdims=True), approx=True)
        agg = jnp.dot(p.astype(jnp.bfloat16), hb,
                      preferred_element_type=jnp.float32)            # (N, FP)
        x = jnp.maximum(agg * inv + bias_ref[l], 0.0)                # bias+ReLU
    out_ref[...] = x                               # single lane-dense store


def _gnn_fused_call(x_p, adj, w_all, asrc_all, adst_all, bias_all, vmem_limit):
    n, fp = x_p.shape
    vmem = pl.BlockSpec(memory_space=pltpu.MemorySpace.VMEM)
    return pl.pallas_call(
        _gnn_fused_kernel,
        out_shape=jax.ShapeDtypeStruct((n, fp), jnp.float32),
        in_specs=[vmem] * 6,
        out_specs=vmem,
        compiler_params=pltpu.CompilerParams(vmem_limit_bytes=vmem_limit),
    )(x_p, adj, w_all, asrc_all, adst_all, bias_all)


# ---------------------------------------------------------------------------
# Tiled path, per layer = projection call + attention/aggregation call.
# ---------------------------------------------------------------------------
def _gat_proj_kernel(x_ref, w_ref, asrc_ref, adst_ref,
                     h_ref, adst_out_ref, asrc_out_ref):
    # x: (T, FP) f32/bf16 ; w: (FP, FP) bf16 ; asrc: (1, FP) bf16 ; adst: (FP,1)
    xb = x_ref[...].astype(jnp.bfloat16)
    h = jnp.dot(xb, w_ref[...], preferred_element_type=jnp.float32)  # (T, FP)
    hb = h.astype(jnp.bfloat16)
    h_ref[...] = hb                                                  # bf16 out
    adst_out_ref[...] = jnp.dot(hb, adst_ref[...],
                                preferred_element_type=jnp.float32)  # (T, 1)
    asrc_out_ref[...] = lax.dot_general(hb, asrc_ref[...],
                                        (((1,), (1,)), ((), ())),
                                        preferred_element_type=jnp.float32)


def _gat_layer_proj(x_cur, w, asrc, adst, *, tile, vmem_limit):
    n_pad, fp = x_cur.shape
    grid = (n_pad // tile,)
    return pl.pallas_call(
        _gat_proj_kernel,
        grid=grid,
        out_shape=(jax.ShapeDtypeStruct((n_pad, fp), jnp.bfloat16),  # h
                   jax.ShapeDtypeStruct((n_pad, 1), jnp.float32),    # a_dst
                   jax.ShapeDtypeStruct((n_pad, 1), jnp.float32)),   # a_src
        in_specs=[
            pl.BlockSpec((tile, fp), lambda i: (i, 0)),   # x tile
            pl.BlockSpec((fp, fp), lambda i: (0, 0)),     # w (resident)
            pl.BlockSpec((1, fp), lambda i: (0, 0)),      # att_src
            pl.BlockSpec((fp, 1), lambda i: (0, 0)),      # att_dst
        ],
        out_specs=(pl.BlockSpec((tile, fp), lambda i: (i, 0)),
                   pl.BlockSpec((tile, 1), lambda i: (i, 0)),
                   pl.BlockSpec((tile, 1), lambda i: (i, 0))),
        compiler_params=pltpu.CompilerParams(
            dimension_semantics=("parallel",),
            vmem_limit_bytes=vmem_limit),
    )(x_cur, w, asrc, adst)


def _gat_attn_kernel(h_ref, adst_ref, asrc_ref, bias_ref, adj_ref, out_ref):
    # h:    (Np, FP) bf16 resident (precomputed)
    # adst: (T, 1)   f32 this tile's destination attention term
    # asrc: (1, Np)  f32 source attention terms (resident)
    # adj:  (T, Np)  int8 tile of the adjacency
    # out:  (T, FP)
    e = adst_ref[...] + asrc_ref[...]                                # (T, Np)
    e = jnp.where(e > 0, e, 0.2 * e)                                 # LeakyReLU
    e = jnp.where(adj_ref[...] != 0, e, NEG_INF)
    p = jnp.exp(e - jnp.max(e, axis=-1, keepdims=True))
    inv = pl.reciprocal(jnp.sum(p, axis=-1, keepdims=True), approx=True)
    agg = jnp.dot(p.astype(jnp.bfloat16), h_ref[...],
                  preferred_element_type=jnp.float32)                # (T, FP)
    out_ref[...] = jnp.maximum(agg * inv + bias_ref[...], 0.0).astype(
        out_ref.dtype)


def _gat_layer_attn(h, a_dst, a_src_row, bias, adj, *, tile, out_dtype,
                    vmem_limit):
    n_pad, fp = h.shape
    grid = (n_pad // tile,)
    return pl.pallas_call(
        _gat_attn_kernel,
        grid=grid,
        out_shape=jax.ShapeDtypeStruct((n_pad, fp), out_dtype),
        in_specs=[
            pl.BlockSpec((n_pad, fp), lambda i: (0, 0)),   # h (resident bf16)
            pl.BlockSpec((tile, 1), lambda i: (i, 0)),     # a_dst tile
            pl.BlockSpec((1, n_pad), lambda i: (0, 0)),    # a_src (resident)
            pl.BlockSpec((1, fp), lambda i: (0, 0)),       # bias (resident)
            pl.BlockSpec((tile, n_pad), lambda i: (i, 0),  # adj tile int8
                         pipeline_mode=pl.Buffered(3)),    # deep-buffer DMA
        ],
        out_specs=pl.BlockSpec((tile, fp), lambda i: (i, 0)),
        compiler_params=pltpu.CompilerParams(
            dimension_semantics=("parallel",),   # shards dst tiles on v7x
            vmem_limit_bytes=vmem_limit),
    )(h, a_dst, a_src_row, bias, adj)


# ---------------------------------------------------------------------------
# Parameter / input packing.
# ---------------------------------------------------------------------------
def _round_up(v, m):
    return -(-v // m) * m


def _pad2d(a, rows, cols):
    return jnp.zeros((rows, cols), a.dtype).at[:a.shape[0], :a.shape[1]].set(a)


def _pack_params(params, fp):
    # Weights / attention vectors pre-cast to bf16 on the host (halves DMA /
    # VMEM and removes per-layer in-kernel casts); bias stays f32.
    w_l, s_l, d_l, b_l = [], [], [], []
    for w, a_s, a_d, b in params:
        w_l.append(_pad2d(w, fp, fp).astype(jnp.bfloat16))
        s_l.append(_pad2d(a_s, 1, fp).astype(jnp.bfloat16))
        d_l.append(_pad2d(a_d, fp, 1).astype(jnp.bfloat16))
        b_l.append(_pad2d(b, 1, fp))
    return jnp.stack(w_l), jnp.stack(s_l), jnp.stack(d_l), jnp.stack(b_l)


def _build_adjacency(edge_index, size):
    # Dense int8 adjacency adj[dst, src] = 1 ; self loops on EVERY row
    # (including padded rows) so each softmax row has a finite max.
    # NOTE: duplicate edges collapse to multiplicity 1 (simple synthetic graph).
    src, dst = edge_index[0], edge_index[1]
    adj = jnp.zeros((size, size), jnp.int8)
    adj = adj.at[dst, src].set(jnp.int8(1))
    diag = jnp.arange(size)
    adj = adj.at[diag, diag].set(jnp.int8(1))
    return adj


def init_gat_params(key, fin, fout):
    """Deterministic glorot-style init matching GATConv parameter shapes."""
    k1, k2, k3 = jax.random.split(key, 3)
    sw = (6.0 / (fin + fout)) ** 0.5
    w = jax.random.uniform(k1, (fin, fout), jnp.float32, -sw, sw)
    sa = (6.0 / (1 + fout)) ** 0.5
    att_src = jax.random.uniform(k2, (1, fout), jnp.float32, -sa, sa)
    att_dst = jax.random.uniform(k3, (fout, 1), jnp.float32, -sa, sa)
    bias = jnp.zeros((1, fout), jnp.float32)
    return w, att_src, att_dst, bias


def gnn_forward(x, edge_index, params, *, mode="auto", tile=256):
    """x: (N, input_dim) f32, edge_index: (2, E) int32 [src; dst]."""
    n = x.shape[0]
    fout = params[-1][0].shape[1]
    fp = _round_up(max([x.shape[1]] + [w.shape[1] for w, *_ in params]), 128)
    vmem_limit = _vmem_limit_bytes()

    if mode == "auto":
        # Generation-aware threshold: fused path (adj read once, no HBM
        # round trips) whenever its working set fits comfortably in VMEM.
        mode = ("fused"
                if _fused_vmem_bytes(n, fp, len(params)) <= 0.5 * vmem_limit
                else "tiled")

    w_all, asrc_all, adst_all, bias_all = _pack_params(params, fp)

    if mode == "fused":
        adj = _build_adjacency(edge_index, n)                 # (n, n) int8
        x_p = _pad2d(x.astype(jnp.float32), n, fp)            # lane-dense
        out = _gnn_fused_call(x_p, adj, w_all, asrc_all, adst_all, bias_all,
                              vmem_limit)
        return out[:n, :fout]

    # --- Tiled path (scales with N) ------------------------------------
    tile = max(32, (min(int(tile), _round_up(n, 32)) // 32) * 32)
    # Shrink the dst tile until the per-call VMEM estimate fits the budget
    # (matters on v7x's 64 MiB).
    while tile > 32 and _tiled_vmem_bytes(_round_up(n, tile), fp,
                                          tile) > vmem_limit:
        tile = max(32, ((tile // 2) // 32) * 32)
    n_pad = _round_up(n, tile)
    n_tiles = n_pad // tile
    if n_tiles > 1 and n_tiles % 2 == 1:
        n_pad += tile                                 # even grid for v7x's 2 TCs

    adj = _build_adjacency(edge_index, n_pad)         # (n_pad, n_pad) int8
    x_cur = _pad2d(x.astype(jnp.float32), n_pad, fp)

    num_layers = w_all.shape[0]
    for l in range(num_layers):
        # (a) projection: h, a_dst, a_src computed once over all rows.
        h, a_dst, a_src_col = _gat_layer_proj(
            x_cur, w_all[l], asrc_all[l], adst_all[l],
            tile=tile, vmem_limit=vmem_limit)
        a_src_row = jnp.reshape(a_src_col, (1, n_pad))        # tiny transpose
        # (b) dst-tiled attention / aggregation over the precomputed h.
        out_dtype = jnp.float32 if l == num_layers - 1 else jnp.bfloat16
        x_cur = _gat_layer_attn(h, a_dst, a_src_row, bias_all[l], adj,
                                tile=tile, out_dtype=out_dtype,
                                vmem_limit=vmem_limit)
    return x_cur[:n, :fout]


# ---------------------------------------------------------------------------
# Pure-JAX reference (same dense-adjacency + bf16-matmul numerics).
# ---------------------------------------------------------------------------
def gnn_reference(x, edge_index, params):
    n = x.shape[0]
    src, dst = edge_index[0], edge_index[1]
    adj = jnp.zeros((n, n), jnp.float32).at[dst, src].set(1.0)
    adj = jnp.maximum(adj, jnp.eye(n, dtype=jnp.float32))
    mask = adj > 0.5
    hi = lax.Precision.HIGHEST
    for w, a_s, a_d, b in params:
        h = jnp.dot(x.astype(jnp.bfloat16), w.astype(jnp.bfloat16),
                    preferred_element_type=jnp.float32, precision=hi)
        hb = h.astype(jnp.bfloat16)
        e = (jnp.dot(hb, a_d.astype(jnp.bfloat16),
                     preferred_element_type=jnp.float32, precision=hi)
             + jnp.dot(a_s.astype(jnp.bfloat16), hb.T,
                       preferred_element_type=jnp.float32, precision=hi))
        e = jnp.where(e > 0, e, 0.2 * e)
        e = jnp.where(mask, e, NEG_INF)
        p = jnp.exp(e - jnp.max(e, axis=-1, keepdims=True))
        denom = jnp.sum(p, axis=-1, keepdims=True)
        agg = jnp.dot(p.astype(jnp.bfloat16), hb,
                      preferred_element_type=jnp.float32, precision=hi)
        x = jnp.maximum(agg / denom + b, 0.0)
    return x


if __name__ == "__main__":
    key = jax.random.PRNGKey(0)
    N, E = 64, 256
    input_dim, hidden_dim, output_dim, num_layers = 16, 32, 8, 3

    k_x, k_src, k_dst, k_p = jax.random.split(key, 4)
    x = jax.random.normal(k_x, (N, input_dim), jnp.float32)
    src = jax.random.randint(k_src, (E,), 0, N, dtype=jnp.int32)
    dst = jax.random.randint(k_dst, (E,), 0, N, dtype=jnp.int32)
    edge_index = jnp.stack([src, dst], axis=0)

    layer_dims = ([(input_dim, hidden_dim)]
                  + [(hidden_dim, hidden_dim)] * (num_layers - 2)
                  + [(hidden_dim, output_dim)])
    params = []
    pk = k_p
    for fin, fout in layer_dims:
        pk, sub = jax.random.split(pk)
        params.append(init_gat_params(sub, fin, fout))

    out_fused = jax.block_until_ready(
        gnn_forward(x, edge_index, params, mode="fused"))
    out_tiled = jax.block_until_ready(
        gnn_forward(x, edge_index, params, mode="tiled", tile=32))
    ref = jax.block_until_ready(gnn_reference(x, edge_index, params))

    assert out_fused.shape == (N, output_dim)
    assert out_tiled.shape == (N, output_dim)
    assert bool(jnp.all(jnp.isfinite(out_fused)))
    assert bool(jnp.all(jnp.isfinite(out_tiled)))
    assert bool(jnp.allclose(out_fused, ref, rtol=1e-2, atol=1e-2)), \
        float(jnp.max(jnp.abs(out_fused - ref)))
    assert bool(jnp.allclose(out_tiled, out_fused, rtol=1e-3, atol=1e-3)), \
        float(jnp.max(jnp.abs(out_tiled - out_fused)))
    print("KERNEL_OK")
</pallas_src>

<mosaic_0001>
module attributes {stable_mosaic.version = 11 : i64} {
  func.func @_gnn_fused_kernel(%arg0: memref<64x128xf32, #tpu.memory_space<vmem>>, %arg1: memref<64x64xi8, #tpu.memory_space<vmem>>, %arg2: memref<3x128x128xbf16, #tpu.memory_space<vmem>>, %arg3: memref<3x1x128xbf16, #tpu.memory_space<vmem>>, %arg4: memref<3x128x1xbf16, #tpu.memory_space<vmem>>, %arg5: memref<3x1x128xf32, #tpu.memory_space<vmem>>, %arg6: memref<64x128xf32, #tpu.memory_space<vmem>>) attributes {dimension_semantics = [], scalar_prefetch = 0 : i64, scratch_operands = 0 : i64, tpu.core_type = #tpu.core_type<tc>} {
    %c0 = arith.constant 0 : index
    %c0_0 = arith.constant 0 : index
    %0 = vector.load %arg0[%c0, %c0_0] : memref<64x128xf32, #tpu.memory_space<vmem>>, vector<64x128xf32>
    %1 = arith.truncf %0 : vector<64x128xf32> to vector<64x128xbf16>
    %c0_1 = arith.constant 0 : index
    %c0_2 = arith.constant 0 : index
    %c0_3 = arith.constant 0 : index
    %2 = vector.load %arg2[%c0_1, %c0_2, %c0_3] : memref<3x128x128xbf16, #tpu.memory_space<vmem>>, vector<1x128x128xbf16>
    %3 = vector.shape_cast %2 : vector<1x128x128xbf16> to vector<128x128xbf16>
    %cst = arith.constant dense<0.000000e+00> : vector<64x128xf32>
    %4 = tpu.matmul %1, %3, %cst {dimension_numbers = #tpu.dot_dimension_numbers<[1], [0], [0], [1], [0, 0, 1, 1], [], []>} : vector<64x128xbf16>, vector<128x128xbf16>, vector<64x128xf32> -> vector<64x128xf32>
    %5 = arith.truncf %4 : vector<64x128xf32> to vector<64x128xbf16>
    %c0_4 = arith.constant 0 : index
    %c0_5 = arith.constant 0 : index
    %c0_6 = arith.constant 0 : index
    %6 = vector.load %arg4[%c0_4, %c0_5, %c0_6] : memref<3x128x1xbf16, #tpu.memory_space<vmem>>, vector<1x128x1xbf16>
    %7 = vector.shape_cast %6 : vector<1x128x1xbf16> to vector<128x1xbf16>
    %cst_7 = arith.constant dense<0.000000e+00> : vector<64x1xf32>
    %8 = tpu.matmul %5, %7, %cst_7 {dimension_numbers = #tpu.dot_dimension_numbers<[1], [0], [0], [1], [0, 0, 1, 1], [], []>} : vector<64x128xbf16>, vector<128x1xbf16>, vector<64x1xf32> -> vector<64x1xf32>
    %c0_8 = arith.constant 0 : index
    %c0_9 = arith.constant 0 : index
    %c0_10 = arith.constant 0 : index
    %9 = vector.load %arg3[%c0_8, %c0_9, %c0_10] : memref<3x1x128xbf16, #tpu.memory_space<vmem>>, vector<1x1x128xbf16>
    %10 = vector.shape_cast %9 : vector<1x1x128xbf16> to vector<1x128xbf16>
    %cst_11 = arith.constant dense<0.000000e+00> : vector<1x64xf32>
    %11 = tpu.matmul %10, %5, %cst_11 {dimension_numbers = #tpu.dot_dimension_numbers<[1], [1], [0], [0], [0, 0, 1, 0], [], []>} : vector<1x128xbf16>, vector<64x128xbf16>, vector<1x64xf32> -> vector<1x64xf32>
    %12 = vector.broadcast %8 : vector<64x1xf32> to vector<64x64xf32>
    %13 = vector.broadcast %11 : vector<1x64xf32> to vector<64x64xf32>
    %14 = arith.addf %12, %13 : vector<64x64xf32>
    %cst_12 = arith.constant 0.000000e+00 : f32
    %15 = vector.broadcast %cst_12 : f32 to vector<64x64xf32>
    %16 = arith.cmpf ogt, %14, %15 : vector<64x64xf32>
    %cst_13 = arith.constant 2.000000e-01 : f32
    %17 = vector.broadcast %cst_13 : f32 to vector<64x64xf32>
    %18 = arith.mulf %17, %14 : vector<64x64xf32>
    %19 = arith.select %16, %14, %18 : vector<64x64xi1>, vector<64x64xf32>
    %c0_14 = arith.constant 0 : index
    %c0_15 = arith.constant 0 : index
    %20 = vector.load %arg1[%c0_14, %c0_15] : memref<64x64xi8, #tpu.memory_space<vmem>>, vector<64x64xi8>
    %c0_i8 = arith.constant 0 : i8
    %21 = vector.broadcast %c0_i8 : i8 to vector<64x64xi8>
    %22 = arith.cmpi ne, %20, %21 : vector<64x64xi8>
    %cst_16 = arith.constant -1.000000e+30 : f32
    %23 = vector.broadcast %cst_16 : f32 to vector<64x64xf32>
    %24 = arith.select %22, %19, %23 : vector<64x64xi1>, vector<64x64xf32>
    %cst_17 = arith.constant dense<0xFF800000> : vector<64xf32>
    %25 = vector.multi_reduction <maximumf>, %24, %cst_17 [1] : vector<64x64xf32> to vector<64xf32>
    %26 = vector.shape_cast %25 : vector<64xf32> to vector<64x1xf32>
    %27 = vector.broadcast %26 : vector<64x1xf32> to vector<64x64xf32>
    %28 = arith.subf %24, %27 : vector<64x64xf32>
    %29 = math.exp %28 : vector<64x64xf32>
    %cst_18 = arith.constant dense<0.000000e+00> : vector<64xf32>
    %30 = vector.multi_reduction <add>, %29, %cst_18 [1] : vector<64x64xf32> to vector<64xf32>
    %31 = vector.shape_cast %30 : vector<64xf32> to vector<64x1xf32>
    %32 = tpu.reciprocal %31 {approx = true} : vector<64x1xf32> -> vector<64x1xf32>
    %33 = arith.truncf %29 : vector<64x64xf32> to vector<64x64xbf16>
    %cst_19 = arith.constant dense<0.000000e+00> : vector<64x128xf32>
    %34 = tpu.matmul %33, %5, %cst_19 {dimension_numbers = #tpu.dot_dimension_numbers<[1], [0], [0], [1], [0, 0, 1, 1], [], []>} : vector<64x64xbf16>, vector<64x128xbf16>, vector<64x128xf32> -> vector<64x128xf32>
    %35 = vector.broadcast %32 : vector<64x1xf32> to vector<64x128xf32>
    %36 = arith.mulf %34, %35 : vector<64x128xf32>
    %c0_20 = arith.constant 0 : index
    %c0_21 = arith.constant 0 : index
    %c0_22 = arith.constant 0 : index
    %37 = vector.load %arg5[%c0_20, %c0_21, %c0_22] : memref<3x1x128xf32, #tpu.memory_space<vmem>>, vector<1x1x128xf32>
    %38 = vector.shape_cast %37 : vector<1x1x128xf32> to vector<1x128xf32>
    %39 = vector.broadcast %38 : vector<1x128xf32> to vector<64x128xf32>
    %40 = arith.addf %36, %39 : vector<64x128xf32>
    %cst_23 = arith.constant 0.000000e+00 : f32
    %41 = vector.broadcast %cst_23 : f32 to vector<64x128xf32>
    %42 = arith.maximumf %40, %41 : vector<64x128xf32>
    %43 = arith.truncf %42 : vector<64x128xf32> to vector<64x128xbf16>
    %c1 = arith.constant 1 : index
    %c0_24 = arith.constant 0 : index
    %c0_25 = arith.constant 0 : index
    %44 = vector.load %arg2[%c1, %c0_24, %c0_25] : memref<3x128x128xbf16, #tpu.memory_space<vmem>>, vector<1x128x128xbf16>
    %45 = vector.shape_cast %44 : vector<1x128x128xbf16> to vector<128x128xbf16>
    %cst_26 = arith.constant dense<0.000000e+00> : vector<64x128xf32>
    %46 = tpu.matmul %43, %45, %cst_26 {dimension_numbers = #tpu.dot_dimension_numbers<[1], [0], [0], [1], [0, 0, 1, 1], [], []>} : vector<64x128xbf16>, vector<128x128xbf16>, vector<64x128xf32> -> vector<64x128xf32>
    %47 = arith.truncf %46 : vector<64x128xf32> to vector<64x128xbf16>
    %c1_27 = arith.constant 1 : index
    %c0_28 = arith.constant 0 : index
    %c0_29 = arith.constant 0 : index
    %48 = vector.load %arg4[%c1_27, %c0_28, %c0_29] : memref<3x128x1xbf16, #tpu.memory_space<vmem>>, vector<1x128x1xbf16>
    %49 = vector.shape_cast %48 : vector<1x128x1xbf16> to vector<128x1xbf16>
    %cst_30 = arith.constant dense<0.000000e+00> : vector<64x1xf32>
    %50 = tpu.matmul %47, %49, %cst_30 {dimension_numbers = #tpu.dot_dimension_numbers<[1], [0], [0], [1], [0, 0, 1, 1], [], []>} : vector<64x128xbf16>, vector<128x1xbf16>, vector<64x1xf32> -> vector<64x1xf32>
    %c1_31 = arith.constant 1 : index
    %c0_32 = arith.constant 0 : index
    %c0_33 = arith.constant 0 : index
    %51 = vector.load %arg3[%c1_31, %c0_32, %c0_33] : memref<3x1x128xbf16, #tpu.memory_space<vmem>>, vector<1x1x128xbf16>
    %52 = vector.shape_cast %51 : vector<1x1x128xbf16> to vector<1x128xbf16>
    %cst_34 = arith.constant dense<0.000000e+00> : vector<1x64xf32>
    %53 = tpu.matmul %52, %47, %cst_34 {dimension_numbers = #tpu.dot_dimension_numbers<[1], [1], [0], [0], [0, 0, 1, 0], [], []>} : vector<1x128xbf16>, vector<64x128xbf16>, vector<1x64xf32> -> vector<1x64xf32>
    %54 = vector.broadcast %50 : vector<64x1xf32> to vector<64x64xf32>
    %55 = vector.broadcast %53 : vector<1x64xf32> to vector<64x64xf32>
    %56 = arith.addf %54, %55 : vector<64x64xf32>
    %cst_35 = arith.constant 0.000000e+00 : f32
    %57 = vector.broadcast %cst_35 : f32 to vector<64x64xf32>
    %58 = arith.cmpf ogt, %56, %57 : vector<64x64xf32>
    %cst_36 = arith.constant 2.000000e-01 : f32
    %59 = vector.broadcast %cst_36 : f32 to vector<64x64xf32>
    %60 = arith.mulf %59, %56 : vector<64x64xf32>
    %61 = arith.select %58, %56, %60 : vector<64x64xi1>, vector<64x64xf32>
    %c0_37 = arith.constant 0 : index
    %c0_38 = arith.constant 0 : index
    %62 = vector.load %arg1[%c0_37, %c0_38] : memref<64x64xi8, #tpu.memory_space<vmem>>, vector<64x64xi8>
    %c0_i8_39 = arith.constant 0 : i8
    %63 = vector.broadcast %c0_i8_39 : i8 to vector<64x64xi8>
    %64 = arith.cmpi ne, %62, %63 : vector<64x64xi8>
    %cst_40 = arith.constant -1.000000e+30 : f32
    %65 = vector.broadcast %cst_40 : f32 to vector<64x64xf32>
    %66 = arith.select %64, %61, %65 : vector<64x64xi1>, vector<64x64xf32>
    %cst_41 = arith.constant dense<0xFF800000> : vector<64xf32>
    %67 = vector.multi_reduction <maximumf>, %66, %cst_41 [1] : vector<64x64xf32> to vector<64xf32>
    %68 = vector.shape_cast %67 : vector<64xf32> to vector<64x1xf32>
    %69 = vector.broadcast %68 : vector<64x1xf32> to vector<64x64xf32>
    %70 = arith.subf %66, %69 : vector<64x64xf32>
    %71 = math.exp %70 : vector<64x64xf32>
    %cst_42 = arith.constant dense<0.000000e+00> : vector<64xf32>
    %72 = vector.multi_reduction <add>, %71, %cst_42 [1] : vector<64x64xf32> to vector<64xf32>
    %73 = vector.shape_cast %72 : vector<64xf32> to vector<64x1xf32>
    %74 = tpu.reciprocal %73 {approx = true} : vector<64x1xf32> -> vector<64x1xf32>
    %75 = arith.truncf %71 : vector<64x64xf32> to vector<64x64xbf16>
    %cst_43 = arith.constant dense<0.000000e+00> : vector<64x128xf32>
    %76 = tpu.matmul %75, %47, %cst_43 {dimension_numbers = #tpu.dot_dimension_numbers<[1], [0], [0], [1], [0, 0, 1, 1], [], []>} : vector<64x64xbf16>, vector<64x128xbf16>, vector<64x128xf32> -> vector<64x128xf32>
    %77 = vector.broadcast %74 : vector<64x1xf32> to vector<64x128xf32>
    %78 = arith.mulf %76, %77 : vector<64x128xf32>
    %c1_44 = arith.constant 1 : index
    %c0_45 = arith.constant 0 : index
    %c0_46 = arith.constant 0 : index
    %79 = vector.load %arg5[%c1_44, %c0_45, %c0_46] : memref<3x1x128xf32, #tpu.memory_space<vmem>>, vector<1x1x128xf32>
    %80 = vector.shape_cast %79 : vector<1x1x128xf32> to vector<1x128xf32>
    %81 = vector.broadcast %80 : vector<1x128xf32> to vector<64x128xf32>
    %82 = arith.addf %78, %81 : vector<64x128xf32>
    %cst_47 = arith.constant 0.000000e+00 : f32
    %83 = vector.broadcast %cst_47 : f32 to vector<64x128xf32>
    %84 = arith.maximumf %82, %83 : vector<64x128xf32>
    %85 = arith.truncf %84 : vector<64x128xf32> to vector<64x128xbf16>
    %c2 = arith.constant 2 : index
    %c0_48 = arith.constant 0 : index
    %c0_49 = arith.constant 0 : index
    %86 = vector.load %arg2[%c2, %c0_48, %c0_49] : memref<3x128x128xbf16, #tpu.memory_space<vmem>>, vector<1x128x128xbf16>
    %87 = vector.shape_cast %86 : vector<1x128x128xbf16> to vector<128x128xbf16>
    %cst_50 = arith.constant dense<0.000000e+00> : vector<64x128xf32>
    %88 = tpu.matmul %85, %87, %cst_50 {dimension_numbers = #tpu.dot_dimension_numbers<[1], [0], [0], [1], [0, 0, 1, 1], [], []>} : vector<64x128xbf16>, vector<128x128xbf16>, vector<64x128xf32> -> vector<64x128xf32>
    %89 = arith.truncf %88 : vector<64x128xf32> to vector<64x128xbf16>
    %c2_51 = arith.constant 2 : index
    %c0_52 = arith.constant 0 : index
    %c0_53 = arith.constant 0 : index
    %90 = vector.load %arg4[%c2_51, %c0_52, %c0_53] : memref<3x128x1xbf16, #tpu.memory_space<vmem>>, vector<1x128x1xbf16>
    %91 = vector.shape_cast %90 : vector<1x128x1xbf16> to vector<128x1xbf16>
    %cst_54 = arith.constant dense<0.000000e+00> : vector<64x1xf32>
    %92 = tpu.matmul %89, %91, %cst_54 {dimension_numbers = #tpu.dot_dimension_numbers<[1], [0], [0], [1], [0, 0, 1, 1], [], []>} : vector<64x128xbf16>, vector<128x1xbf16>, vector<64x1xf32> -> vector<64x1xf32>
    %c2_55 = arith.constant 2 : index
    %c0_56 = arith.constant 0 : index
    %c0_57 = arith.constant 0 : index
    %93 = vector.load %arg3[%c2_55, %c0_56, %c0_57] : memref<3x1x128xbf16, #tpu.memory_space<vmem>>, vector<1x1x128xbf16>
    %94 = vector.shape_cast %93 : vector<1x1x128xbf16> to vector<1x128xbf16>
    %cst_58 = arith.constant dense<0.000000e+00> : vector<1x64xf32>
    %95 = tpu.matmul %94, %89, %cst_58 {dimension_numbers = #tpu.dot_dimension_numbers<[1], [1], [0], [0], [0, 0, 1, 0], [], []>} : vector<1x128xbf16>, vector<64x128xbf16>, vector<1x64xf32> -> vector<1x64xf32>
    %96 = vector.broadcast %92 : vector<64x1xf32> to vector<64x64xf32>
    %97 = vector.broadcast %95 : vector<1x64xf32> to vector<64x64xf32>
    %98 = arith.addf %96, %97 : vector<64x64xf32>
    %cst_59 = arith.constant 0.000000e+00 : f32
    %99 = vector.broadcast %cst_59 : f32 to vector<64x64xf32>
    %100 = arith.cmpf ogt, %98, %99 : vector<64x64xf32>
    %cst_60 = arith.constant 2.000000e-01 : f32
    %101 = vector.broadcast %cst_60 : f32 to vector<64x64xf32>
    %102 = arith.mulf %101, %98 : vector<64x64xf32>
    %103 = arith.select %100, %98, %102 : vector<64x64xi1>, vector<64x64xf32>
    %c0_61 = arith.constant 0 : index
    %c0_62 = arith.constant 0 : index
    %104 = vector.load %arg1[%c0_61, %c0_62] : memref<64x64xi8, #tpu.memory_space<vmem>>, vector<64x64xi8>
    %c0_i8_63 = arith.constant 0 : i8
    %105 = vector.broadcast %c0_i8_63 : i8 to vector<64x64xi8>
    %106 = arith.cmpi ne, %104, %105 : vector<64x64xi8>
    %cst_64 = arith.constant -1.000000e+30 : f32
    %107 = vector.broadcast %cst_64 : f32 to vector<64x64xf32>
    %108 = arith.select %106, %103, %107 : vector<64x64xi1>, vector<64x64xf32>
    %cst_65 = arith.constant dense<0xFF800000> : vector<64xf32>
    %109 = vector.multi_reduction <maximumf>, %108, %cst_65 [1] : vector<64x64xf32> to vector<64xf32>
    %110 = vector.shape_cast %109 : vector<64xf32> to vector<64x1xf32>
    %111 = vector.broadcast %110 : vector<64x1xf32> to vector<64x64xf32>
    %112 = arith.subf %108, %111 : vector<64x64xf32>
    %113 = math.exp %112 : vector<64x64xf32>
    %cst_66 = arith.constant dense<0.000000e+00> : vector<64xf32>
    %114 = vector.multi_reduction <add>, %113, %cst_66 [1] : vector<64x64xf32> to vector<64xf32>
    %115 = vector.shape_cast %114 : vector<64xf32> to vector<64x1xf32>
    %116 = tpu.reciprocal %115 {approx = true} : vector<64x1xf32> -> vector<64x1xf32>
    %117 = arith.truncf %113 : vector<64x64xf32> to vector<64x64xbf16>
    %cst_67 = arith.constant dense<0.000000e+00> : vector<64x128xf32>
    %118 = tpu.matmul %117, %89, %cst_67 {dimension_numbers = #tpu.dot_dimension_numbers<[1], [0], [0], [1], [0, 0, 1, 1], [], []>} : vector<64x64xbf16>, vector<64x128xbf16>, vector<64x128xf32> -> vector<64x128xf32>
    %119 = vector.broadcast %116 : vector<64x1xf32> to vector<64x128xf32>
    %120 = arith.mulf %118, %119 : vector<64x128xf32>
    %c2_68 = arith.constant 2 : index
    %c0_69 = arith.constant 0 : index
    %c0_70 = arith.constant 0 : index
    %121 = vector.load %arg5[%c2_68, %c0_69, %c0_70] : memref<3x1x128xf32, #tpu.memory_space<vmem>>, vector<1x1x128xf32>
    %122 = vector.shape_cast %121 : vector<1x1x128xf32> to vector<1x128xf32>
    %123 = vector.broadcast %122 : vector<1x128xf32> to vector<64x128xf32>
    %124 = arith.addf %120, %123 : vector<64x128xf32>
    %cst_71 = arith.constant 0.000000e+00 : f32
    %125 = vector.broadcast %cst_71 : f32 to vector<64x128xf32>
    %126 = arith.maximumf %124, %125 : vector<64x128xf32>
    %c0_72 = arith.constant 0 : index
    %c0_73 = arith.constant 0 : index
    %127 = vector.load %arg6[%c0_72, %c0_73] : memref<64x128xf32, #tpu.memory_space<vmem>>, vector<64x128xf32>
    tpu.vector_store %arg6[%c0_72, %c0_73], %126 {strides = array<i32>} : memref<64x128xf32, #tpu.memory_space<vmem>>, vector<64x128xf32>,
    return
  }
}

</mosaic_0001>

<bundles_post_ra>
// kernel: tpu_custom_call.1
= control target key start
LH: loop header
LB: loop body
LE: loop exit
PB: predicated region body
PF: predicated region fallthrough
CT: control target
= control target key end

     0   :  { %11 = vsyncpa [#allocation3], 0  ;;  %s3013_s0 = inlined_call_operand.hbm [shape: f32[64,128], index: 0, kind: input, shape index: {}]   ;;  %s3014_s1 = inlined_call_operand.hbm [shape: s8[64,64], index: 1, kind: input, shape index: {}]   ;;  %s3015_s2 = inlined_call_operand.vmem [shape: bf16[3,128,128], index: 2, kind: input, shape index: {}]   ;;  %s3016_s3 = inlined_call_operand.vmem [shape: bf16[3,1,128], index: 3, kind: input, shape index: {}]   ;;  %s3017_s4 = inlined_call_operand.vmem [shape: bf16[3,128,1], index: 4, kind: input, shape index: {}]   ;;  %s3018_s5 = inlined_call_operand.vmem [shape: f32[3,1,128], index: 5, kind: input, shape index: {}]   ;;  %s3019_s6 = inlined_call_operand.hbm [shape: f32[64,128], index: 6, kind: output, shape index: {}]  }
   0x1   :  { %12 = vsyncpa [#allocation6], 0 }
   0x2   :  { %13 = vsyncpa [#allocation4], 0  ;;  %s2599_s21 = smov [#allocation2]  }
   0x3   :  { %s19_s22 = sshll.u32 %s2599_s21, 4  ;;  %s20_s22 = int_to_ptr.vmem [resolvable:$true] %s19_s22 }
   0x4   :  { %s2541_s23 = scalar_lea.vmem %s20_s22, 1024  ;;  %p2546_p1 = scmp.lt.s32.totalorder %s20_s22, %s20_s22 }
   0x5   :  { %p2542_p0 = scmp.ne.s32.totalorder %s20_s22, %s2541_s23  ;;  %p2547_p2 = scmp.lt.s32.totalorder %s2541_s23, %s2541_s23 }
   0x7   :  { %p2548_p3 = por %p2547_p2, %p2546_p1 }
   0x9   :  { %p2549_p4 = pnand %p2548_p3, %p2542_p0 }
   0xb   :  { %2552 = shalt.err (!%p2549_p4)
}
   0xc   :  { %s2600_s24 = smov 128   ;;  %s2601_s25 = smov 8  }
   0xd   :  { %25 = dma.hbm_to_vmem [thread:$0]  %s3013_s0, 1024, %s20_s22, [#allocation3], %s2600_s24, %s2600_s24, %s2601_s25  }
   0xe   :  { %s2602_s28 = smov [#allocation5]  }
   0xf   :  { %s31_s29 = sshll.u32 %s2602_s28, 4  ;;  %s32_s29 = int_to_ptr.vmem [resolvable:$true] %s31_s29 }
  0x10   :  { %s2561_s30 = scalar_lea.vmem %s32_s29, 256  ;;  %p2566_p6 = scmp.lt.s32.totalorder %s32_s29, %s32_s29 }
  0x11   :  { %p2562_p5 = scmp.ne.s32.totalorder %s32_s29, %s2561_s30  ;;  %p2567_p7 = scmp.lt.s32.totalorder %s2561_s30, %s2561_s30 }
  0x13   :  { %p2568_p8 = por %p2567_p7, %p2566_p6 }
  0x15   :  { %p2569_p9 = pnand %p2568_p8, %p2562_p5 }
  0x17   :  { %2572 = shalt.err (!%p2569_p9)
}
  0x18   :  { %37 = dma.hbm_to_vmem [thread:$0]  %s3014_s1, 256, %s32_s29, [#allocation6], %s2600_s24, %s2600_s24, %s2601_s25  }
  0x19   :  { %2593 = dma.done.wait [#allocation3], 1024  }
  0x1a   :  { %2594 = vsyncadd [#allocation3], 4294966272 }
  0x1b   :  { %2595 = dma.done.wait [#allocation6], 256  }
  0x1c   :  { %2596 = vsyncadd [#allocation6], 4294967040  ;;  %v2389_v0 = vld [vmem:[%s3015_s2 + $0x38] sm:$0xff]   ;;  %v2390_v1 = vld [vmem:[%s3015_s2 + $0x30] sm:$0xff]   ;;  %v2603_v28 = vmov 0.0   ;;  %vm2604_vm0 = vmmov 0   ;;  %v410_v62 = vlaneseq }
  0x1d   :  { %2151 = vmatprep.subr.bf16.mxu0 %v2389_v0  ;;  %v2391_v2 = vld [vmem:[%s3015_s2 + $0x28] sm:$0xff]   ;;  %v2392_v3 = vld [vmem:[%s3015_s2 + $0x20] sm:$0xff]   ;;  %v2393_v7 = vld [vmem:[%s3015_s2 + $0x18] sm:$0xff]   ;;  %v2605_v29 = vmov 0   ;;  %vm516_vm11 = vcmask 523264  }
  0x1e   :  { %2152 = vmatpush3.bf16.msra.mxu0 %v2389_v0  ;;  %v55_v4 = vld [vmem:[#allocation2] sm:$0xff]  ;;  %v56_v5 = vld [vmem:[#allocation2 + $0x8] sm:$0xff]  ;;  %v2397_v8 = vld [vmem:[%s3017_s4 + $0x38] sm:$0xff]   ;;  %2388 = vset.pattern.permute.xlu1 %v2605_v29 }
  0x1f   :  { %2153 = vmatprep.subr.bf16.mxu0 %v2390_v1  ;;  %v63_v6 = vpack.c.bf16 %v56_v5, %v55_v4  ;;  %v2398_v9 = vld [vmem:[%s3017_s4 + $0x30] sm:$0xff]   ;;  %2175 = vmatprep.subr.bf16.mxu1 %v2397_v8  ;;  %v2399_v10 = vld [vmem:[%s3017_s4 + $0x28] sm:$0xff]   ;;  %v2400_v12 = vld [vmem:[%s3017_s4 + $0x20] sm:$0xff]   ;;  %v411_v5 = vshrl.u32 %v410_v62, 7 }
  0x20   :  { %2176 = vmatpush3.bf16.msra.mxu1 %v2397_v8  ;;  %v2394_v11 = vld [vmem:[%s3015_s2 + $0x10] sm:$0xff]   ;;  %v2395_v13 = vld [vmem:[%s3015_s2 + $0x8] sm:$0xff]   ;;  %v2401_v14 = vld [vmem:[%s3017_s4 + $0x18] sm:$0xff]   ;;  %2387 = vset.pattern.permute.xlu0 %v2605_v29 }
  0x21   :  { %2167 = vmatprep.mubr.bf16.mxu0 %v63_v6  ;;  %2177 = vmatprep.subr.bf16.mxu1 %v2398_v9  ;;  %v2396_v15 = vld [vmem:[%s3015_s2] sm:$0xff]   ;;  %v57_v16 = vld [vmem:[#allocation2 + $0x10] sm:$0xff]  ;;  %v58_v17 = vld [vmem:[#allocation2 + $0x18] sm:$0xff] }
  0x22   :  { %2154 = vmatpush3.bf16.msra.mxu0 %v2390_v1  ;;  %v2402_v18 = vld [vmem:[%s3017_s4 + $0x10] sm:$0xff]   ;;  %v59_v19 = vld [vmem:[#allocation2 + $0x20] sm:$0xff]  ;;  %v60_v20 = vld [vmem:[#allocation2 + $0x28] sm:$0xff]  ;;  %v64_v21 = vpack.c.bf16 %v58_v17, %v57_v16 }
  0x23   :  { %2155 = vmatprep.subr.bf16.mxu0 %v2391_v2  ;;  %v65_v22 = vpack.c.bf16 %v60_v20, %v59_v19  ;;  %v61_v23 = vld [vmem:[#allocation2 + $0x30] sm:$0xff]  ;;  %v62_v24 = vld [vmem:[#allocation2 + $0x38] sm:$0xff]  ;;  %v2403_v26 = vld [vmem:[%s3017_s4 + $0x8] sm:$0xff]  }
  0x24   :  { %2178 = vmatpush3.bf16.msra.mxu1 %v2398_v9  ;;  %v66_v25 = vpack.c.bf16 %v62_v24, %v61_v23  ;;  %v2404_v27 = vld [vmem:[%s3017_s4] sm:$0xff]   ;;  %v447_v57 = vld [vmem:[#allocation5 + $0x8] sm:$0xff] }
  0x25   :  { %2179 = vmatprep.subr.bf16.mxu1 %v2399_v10  ;;  %v329_v42 = vld [vmem:[%s3016_s3] sm:$0x1]  ;;  %vm449_vm2 = vnez %v447_v57 }
  0x26   :  { %2156 = vmatpush3.bf16.msra.mxu0 %v2391_v2  ;;  %v446_v55 = vld [vmem:[#allocation5] sm:$0xff]  ;;  %v451_v63 = vsel %vm449_vm2, 16843009, %v2605_v29 }
  0x27   :  { %2157 = vmatprep.subr.bf16.mxu0 %v2392_v3  ;;  %vm448_vm1 = vnez %v446_v55  ;;  %v456_v4 = vunpack.c.0.s8 %v451_v63  ;;  %v459_v17 = vunpack.c.3.s8 %v451_v63 }
  0x28   :  { %2180 = vmatpush3.bf16.msra.mxu1 %v2399_v10  ;;  %v450_v56 = vsel %vm448_vm1, 16843009, %v2605_v29  ;;  %v458_v10 = vunpack.c.2.s8 %v451_v63 }
  0x29   :  { %2181 = vmatprep.subr.bf16.mxu1 %v2400_v12  ;;  %v454_v58 = vunpack.c.2.s8 %v450_v56  ;;  %v452_v59 = vunpack.c.0.s8 %v450_v56  ;;  %v453_v61 = vunpack.c.1.s8 %v450_v56  ;;  %v455_v1 = vunpack.c.3.s8 %v450_v56 }
  0x2a   :  { %2158 = vmatpush3.bf16.msra.mxu0 %v2392_v3  ;;  %v468_v9 = vpack.c.b16 %v456_v4, %v456_v4  ;;  %v472_v16 = vpack.c.b16 %v458_v10, %v458_v10 }
  0x2b   :  { %2159 = vmatprep.subr.bf16.mxu0 %v2393_v7  ;;  %v464_v60 = vpack.c.b16 %v454_v58, %v454_v58  ;;  %v460_v0 = vpack.c.b16 %v452_v59, %v452_v59  ;;  %v462_v3 = vpack.c.b16 %v453_v61, %v453_v61 }
  0x2c   :  { %2182 = vmatpush3.bf16.msra.mxu1 %v2400_v12  ;;  %v457_v12 = vunpack.c.1.s8 %v451_v63 }
  0x2d   :  { %2183 = vmatprep.subr.bf16.mxu1 %v2401_v14  ;;  %v465_v2 = vpack.c.b8 %v464_v60, %v464_v60  ;;  %v461_v6 = vpack.c.b8 %v460_v0, %v460_v0  ;;  %v463_v8 = vpack.c.b8 %v462_v3, %v462_v3 }
  0x2e   :  { %2160 = vmatpush3.bf16.msra.mxu0 %v2393_v7  ;;  %v466_v7 = vpack.c.b16 %v455_v1, %v455_v1  ;;  %v470_v20 = vpack.c.b16 %v457_v12, %v457_v12 }
  0x2f   :  { %2161 = vmatprep.subr.bf16.mxu0 %v2394_v11  ;;  %vm478_vm3 = vnez %v465_v2  ;;  %vm476_vm4 = vnez %v461_v6  ;;  %vm477_vm5 = vnez %v463_v8 }
  0x30   :  { %2184 = vmatpush3.bf16.msra.mxu1 %v2401_v14  ;;  %v467_v14 = vpack.c.b8 %v466_v7, %v466_v7  ;;  %v484_v19 = vsel %vm476_vm4, 16843009, %v2605_v29 }
  0x31   :  { %2185 = vmatprep.subr.bf16.mxu1 %v2402_v18  ;;  %v492_v24 = vunpack.c.0.s8 %v484_v19 }
  0x32   :  { %2162 = vmatpush3.bf16.msra.mxu0 %v2394_v11  ;;  %v2715_v11 = vsub.s32 0, %v411_v5  ;;  %vm479_vm6 = vnez %v467_v14 }
  0x33   :  { %2163 = vmatprep.subr.bf16.mxu0 %v2395_v13  ;;  %vm2731_vm10 = vcmp.ne.s32.totalorder %v492_v24, 0 }
  0x34   :  { %2186 = vmatpush3.bf16.msra.mxu1 %v2402_v18 }
  0x35   :  { %2187 = vmatprep.subr.bf16.mxu1 %v2403_v26 }
  0x36   :  { %2164 = vmatpush3.bf16.msra.mxu0 %v2395_v13  ;;  %v486_v13 = vsel %vm478_vm3, 16843009, %v2605_v29 }
  0x37   :  { %2165 = vmatprep.subr.bf16.mxu0 %v2396_v15 }
  0x38   :  { %2188 = vmatpush3.bf16.msra.mxu1 %v2403_v26  ;;  %v474_v26 = vpack.c.b16 %v459_v17, %v459_v17 }
  0x39   :  { %2189 = vmatprep.subr.bf16.mxu1 %v2404_v27 }
  0x3a   :  { %2166 = vmatpush3.bf16.msra.mxu0 %v2396_v15  ;;  %v469_v15 = vpack.c.b8 %v468_v9, %v468_v9 }
  0x3b   :  { %2199 = vmatprep.subr.bf16.mxu0 %v2603_v28 }
  0x3c   :  { %2190 = vmatpush3.bf16.msra.mxu1 %v2404_v27  ;;  %vm480_vm7 = vnez %v469_v15 }
  0x3d   :  { %2168 = vmatmul.mubr.bf16.vlgmr.msra.gmra.mxu0 %v64_v21  ;;  %v494_v21 = vunpack.c.0.s8 %v486_v13 }
  0x3e   :  { %2171 = vmatprep.mubr.bf16.mxu0 %v65_v22  ;;  %v485_v22 = vsel %vm477_vm5, 16843009, %v2605_v29 }
  0x3f   :  { %vm2724_vm8 = vcmp.ne.s32.totalorder %v494_v21, 0 }
  0x45   :  { %2172 = vmatmul.mubr.bf16.gmra.mxu0 %v66_v25  ;;  %v473_v25 = vpack.c.b8 %v472_v16, %v472_v16 }
  0x46   :  { %2207 = vmatprep.mubr.msk.bf16.mxu0 %vm2604_vm0, %v2603_v28 }
  0x47   :  { %vm482_vm12 = vnez %v473_v25 }
  0xfd   :  { %v2169_v30 = vpop.f32.mrf.mxu0 }
  0xff   :  { %v165_v31 = vpop.f32.mrf.mxu0 }
 0x101   :  { %v2170_v32 = vpop.f32.mrf.mxu0 }
 0x102   :  { %v197_v35 = vpack.c.bf16 %v2170_v32, %v2169_v30  ;;  %v471_v30 = vpack.c.b8 %v470_v20, %v470_v20 }
 0x103   :  { %v168_v33 = vpop.f32.mrf.mxu0 }
 0x104   :  { %v196_v34 = vpack.c.bf16 %v168_v33, %v165_v31  ;;  %v493_v33 = vunpack.c.0.s8 %v485_v22  ;;  %vm481_vm14 = vnez %v471_v30 }
 0x105   :  { %v2173_v36 = vpop.f32.mrf.mxu0 }
 0x106   :  { %2191 = vmatprep.mubr.bf16.mxu1 %v196_v34  ;;  %vm2736_vm15 = vcmp.ne.s32.totalorder %v493_v33, 0 }
 0x107   :  { %v181_v37 = vpop.f32.mrf.mxu0  ;;  %2192 = vmatmul.mubr.bf16.vlgmr.msra.gmra.mxu1 %v197_v35 }
 0x109   :  { %v2174_v38 = vpop.f32.mrf.mxu0 }
 0x10a   :  { %v199_v39 = vpack.c.bf16 %v2174_v38, %v2173_v36 }
 0x10b   :  { %v184_v40 = vpop.f32.mrf.mxu0 }
 0x10c   :  { %v198_v41 = vpack.c.bf16 %v184_v40, %v181_v37  ;;  %2200 = vmatpush3.bf16.xpose.msra.mxu0 %v199_v39  ;;  %2211 = vmatprep.subr.bf16.mxu1 %v199_v39  ;;  %v488_v37 = vsel %vm480_vm7, 16843009, %v2605_v29  ;;  %v475_v40 = vpack.c.b8 %v474_v26, %v474_v26 }
 0x10d   :  { %2212 = vmatpush3.bf16.msra.mxu1 %v199_v39  ;;  %2201 = vmatprep.subr.bf16.mxu0 %v2603_v28 }
 0x10e   :  { %2195 = vmatprep.mubr.bf16.mxu1 %v198_v41  ;;  %2213 = vmatprep.subr.bf16.mxu1 %v198_v41  ;;  %vm2745_vm2 = vnez %v475_v40 }
 0x10f   :  { %2196 = vmatmul.mubr.bf16.gmra.mxu1 %v199_v39  ;;  %v491_v4 = vsel %vm2745_vm2, 16843009, %v2605_v29 }
 0x110   :  { %v499_v17 = vunpack.c.0.s8 %v491_v4 }
 0x111   :  { %2214 = vmatpush3.bf16.msra.mxu1 %v198_v41 }
 0x112   :  { %2215 = vmatprep.subr.bf16.mxu1 %v197_v35 }
 0x114   :  { %2202 = vmatpush3.bf16.xpose.msra.mxu0 %v198_v41 }
 0x115   :  { %2216 = vmatpush3.bf16.msra.mxu1 %v197_v35  ;;  %2203 = vmatprep.subr.bf16.mxu0 %v2603_v28 }
 0x116   :  { %2217 = vmatprep.subr.bf16.mxu1 %v196_v34 }
 0x119   :  { %2218 = vmatpush3.bf16.msra.mxu1 %v196_v34 }
 0x11c   :  { %2204 = vmatpush3.bf16.xpose.msra.mxu0 %v197_v35 }
 0x11d   :  { %2205 = vmatprep.subr.bf16.mxu0 %v2603_v28 }
 0x124   :  { %2206 = vmatpush3.bf16.xpose.msra.mxu0 %v196_v34  ;;  %v487_v34 = vsel %vm479_vm6, 16843009, %v2605_v29 }
 0x12b   :  { %2208 = vmatmul.mubr.bf16.vlgmr.msra.gmra.mxu0 %v329_v42 }
 0x1c7   :  { %v2193_v43 = vpop.f32.mrf.mxu1 }
 0x1c8   :  { %382 = vperm.xlu1 %2388, %v2193_v43  }
 0x1c9   :  { %v298_v44 = vpop.f32.mrf.mxu1 }
 0x1ca   :  { %372 = vperm.xlu0 %2387, %v298_v44  }
 0x1cb   :  { %v2194_v45 = vpop.f32.mrf.mxu1 }
 0x1cc   :  { %387 = vperm.xlu1 %2388, %v2194_v45  }
 0x1cd   :  { %v301_v46 = vpop.f32.mrf.mxu1 }
 0x1ce   :  { %377 = vperm.xlu0 %2387, %v301_v46   ;;  %v495_v46 = vunpack.c.0.s8 %v487_v34 }
 0x1cf   :  { %v2197_v47 = vpop.f32.mrf.mxu1 }
 0x1d0   :  { %vm2752_vm4 = vcmp.ne.s32.totalorder %v495_v46, 0 }
 0x1d1   :  { %v314_v48 = vpop.f32.mrf.mxu1 }
 0x1d2   :  { %392 = vperm.xlu0 %2387, %v314_v48  }
 0x1d3   :  { %v2198_v49 = vpop.f32.mrf.mxu1 }
 0x1d5   :  { %v317_v50 = vpop.f32.mrf.mxu1 }
 0x1d6   :  { %402 = vperm.xlu0 %2387, %v2197_v47   ;;  %397 = vperm.xlu1 %2388, %v317_v50   ;;  %v496_v47 = vunpack.c.0.s8 %v488_v37 }
 0x1d8   :  { %vm2757_vm5 = vcmp.ne.s32.totalorder %v496_v47, 0 }
 0x1da   :  { %407 = vperm.xlu1 %2388, %v2198_v49  }
 0x1eb   :  { %v364_v51 = vpop.f32.mrf.mxu0 }
 0x1ec   :  { %v2719_v18 = vrot.slane %v364_v51, %v2715_v11  ;;  %v490_v51 = vsel %vm482_vm12, 16843009, %v2605_v29 }
 0x1ed   :  { %v2209_v52 = vpop.f32.mrf.mxu0  ;;  %v498_v0 = vunpack.c.0.s8 %v490_v51 }
 0x1ef   :  { %v367_v53 = vpop.f32.mrf.mxu0  ;;  %vm2772_vm7 = vcmp.ne.s32.totalorder %v498_v0, 0 }
 0x1f0   :  { %v489_v53 = vsel %vm481_vm14, 16843009, %v2605_v29  ;;  %vm2789_vm14 = vcmp.ne.s32.totalorder %v499_v17, 0 }
 0x1f1   :  { %v2210_v54 = vpop.f32.mrf.mxu0  ;;  %v497_v3 = vunpack.c.0.s8 %v489_v53 }
 0x243   :  { %v383_v23 = vpop.permute.xlu1 %382 }
 0x244   :  { %v416_v27 = vadd.f32 %v2719_v18, %v383_v23 }
 0x245   :  { %v373_v31 = vpop.permute.xlu0 %372 }
 0x246   :  { %v432_v35 = vmul.f32 0.2, %v416_v27  ;;  %v414_v36 = vadd.f32 %v2719_v18, %v373_v31  ;;  %vm424_vm9 = vcmp.gt.f32.partialorder %v416_v27, 0.0 }
 0x247   :  { %v388_v38 = vpop.permute.xlu1 %387 }
 0x248   :  { %v430_v41 = vmul.f32 0.2, %v414_v36  ;;  %v417_v42 = vadd.f32 %v2719_v18, %v388_v38  ;;  %vm422_vm13 = vcmp.gt.f32.partialorder %v414_v36, 0.0  ;;  %v440_v44 = vsel %vm424_vm9, %v416_v27, %v432_v35 }
 0x249   :  { %v378_v43 = vpop.permute.xlu0 %377  ;;  %v510_v57 = vsel %vm2724_vm8, %v440_v44, -1e+30  ;;  %vm2779_vm9 = vcmp.ne.s32.totalorder %v497_v3, 0 }
 0x24a   :  { %v433_v48 = vmul.f32 0.2, %v417_v42  ;;  %v415_v49 = vadd.f32 %v2719_v18, %v378_v43  ;;  %v438_v50 = vsel %vm422_vm13, %v414_v36, %v430_v41  ;;  %vm425_vm1 = vcmp.gt.f32.partialorder %v417_v42, 0.0 }
 0x24b   :  { %v508_v52 = vsel %vm2731_vm10, %v438_v50, -1e+30  ;;  %v523_v1 = vsel %vm516_vm11, %v510_v57, -inf }
 0x24c   :  { %v431_v55 = vmul.f32 0.2, %v415_v49  ;;  %v517_v56 = vsel %vm516_vm11, %v508_v52, -inf  ;;  %vm423_vm3 = vcmp.gt.f32.partialorder %v415_v49, 0.0  ;;  %v441_v59 = vsel %vm425_vm1, %v417_v42, %v433_v48 }
 0x24d   :  { %518 = vmax.xlane.f32.xlu0 %v517_v56  ;;  %v393_v58 = vpop.permute.xlu0 %392  ;;  %v511_v7 = vsel %vm2752_vm4, %v441_v59, -1e+30 }
 0x24e   :  { %v418_v61 = vadd.f32 %v2719_v18, %v393_v58  ;;  %v439_v62 = vsel %vm423_vm3, %v415_v49, %v431_v55  ;;  %v526_v29 = vsel %vm516_vm11, %v511_v7, -inf }
 0x24f   :  { %v509_v2 = vsel %vm2736_vm15, %v439_v62, -1e+30 }
 0x250   :  { %v434_v5 = vmul.f32 0.2, %v418_v61  ;;  %v520_v6 = vsel %vm516_vm11, %v509_v2, -inf  ;;  %vm426_vm6 = vcmp.gt.f32.partialorder %v418_v61, 0.0 }
 0x251   :  { %524 = vmax.xlane.f32.xlu0 %v523_v1  ;;  %v403_v8 = vpop.permute.xlu0 %402  ;;  %521 = vmax.xlane.f32.xlu1 %v520_v6  ;;  %v398_v9 = vpop.permute.xlu1 %397 }
 0x252   :  { %v420_v10 = vadd.f32 %v2719_v18, %v403_v8  ;;  %v419_v12 = vadd.f32 %v2719_v18, %v398_v9  ;;  %v442_v13 = vsel %vm426_vm6, %v418_v61, %v434_v5 }
 0x253   :  { %v512_v15 = vsel %vm2757_vm5, %v442_v13, -1e+30 }
 0x254   :  { %v436_v19 = vmul.f32 0.2, %v420_v10  ;;  %v435_v20 = vmul.f32 0.2, %v419_v12  ;;  %v529_v21 = vsel %vm516_vm11, %v512_v15, -inf  ;;  %vm428_vm12 = vcmp.gt.f32.partialorder %v420_v10, 0.0 }
 0x255   :  { %527 = vmax.xlane.f32.xlu0 %v526_v29  ;;  %530 = vmax.xlane.f32.xlu1 %v529_v21  ;;  %v408_v22 = vpop.permute.xlu1 %407  ;;  %vm427_vm13 = vcmp.gt.f32.partialorder %v419_v12, 0.0 }
 0x256   :  { %v421_v23 = vadd.f32 %v2719_v18, %v408_v22  ;;  %v444_v24 = vsel %vm428_vm12, %v420_v10, %v436_v19  ;;  %v443_v25 = vsel %vm427_vm13, %v419_v12, %v435_v20 }
 0x257   :  { %v514_v26 = vsel %vm2772_vm7, %v444_v24, -1e+30  ;;  %v513_v27 = vsel %vm2779_vm9, %v443_v25, -1e+30  ;;  %v2405_v24 = vld [vmem:[%s3015_s2 + $0x78] sm:$0xff]   ;;  %v2406_v25 = vld [vmem:[%s3015_s2 + $0x70] sm:$0xff]  }
 0x258   :  { %v437_v31 = vmul.f32 0.2, %v421_v23  ;;  %v535_v33 = vsel %vm516_vm11, %v514_v26, -inf  ;;  %v532_v34 = vsel %vm516_vm11, %v513_v27, -inf  ;;  %vm429_vm1 = vcmp.gt.f32.partialorder %v421_v23, 0.0  ;;  %2227 = vmatprep.subr.bf16.mxu1 %v2405_v24 }
 0x259   :  { %536 = vmax.xlane.f32.xlu1 %v535_v33  ;;  %533 = vmax.xlane.f32.xlu0 %v532_v34  ;;  %v2410_v33 = vld [vmem:[%s3015_s2 + $0x50] sm:$0xff]   ;;  %v2411_v34 = vld [vmem:[%s3015_s2 + $0x48] sm:$0xff]  }
 0x25a   :  { %v445_v18 = vsel %vm429_vm1, %v421_v23, %v437_v31  ;;  %v2409_v31 = vld [vmem:[%s3015_s2 + $0x58] sm:$0xff]  }
 0x25b   :  { %v515_v35 = vsel %vm2789_vm14, %v445_v18, -1e+30  ;;  %v2412_v18 = vld [vmem:[%s3015_s2 + $0x40] sm:$0xff]  }
 0x25c   :  { %v538_v36 = vsel %vm516_vm11, %v515_v35, -inf }
 0x25d   :  { %539 = vmax.xlane.f32.xlu0 %v538_v36  ;;  %v2414_v36 = vld [vmem:[%s3017_s4 + $0x70] sm:$0xff]  }
 0x2d6   :  { %v519_v37 = vpop.xlane.xlu0 %518 }
 0x2d7   :  { %v541_v38 = vsub.f32 %v508_v52, %v519_v37  ;;  %v2415_v37 = vld [vmem:[%s3017_s4 + $0x68] sm:$0xff]  }
 0x2d9   :  { %v549_v40 = vmul.f32 1.442695, %v541_v38  ;;  %v2416_v38 = vld [vmem:[%s3017_s4 + $0x60] sm:$0xff]  }
 0x2da   :  { %v525_v41 = vpop.xlane.xlu0 %524  ;;  %v522_v42 = vpop.xlane.xlu1 %521 }
 0x2db   :  { %2437 = vpow2.f32 %v549_v40  ;;  %v543_v43 = vsub.f32 %v510_v57, %v525_v41  ;;  %v542_v44 = vsub.f32 %v509_v2, %v522_v42  ;;  %v2417_v40 = vld [vmem:[%s3017_s4 + $0x58] sm:$0xff]   ;;  %v2418_v41 = vld [vmem:[%s3017_s4 + $0x50] sm:$0xff]  }
 0x2dd   :  { %v553_v46 = vmul.f32 1.442695, %v543_v43  ;;  %v551_v47 = vmul.f32 1.442695, %v542_v44 }
 0x2de   :  { %v528_v48 = vpop.xlane.xlu0 %527  ;;  %v531_v49 = vpop.xlane.xlu1 %530 }
 0x2df   :  { %2439 = vpow2.f32 %v553_v46  ;;  %v544_v50 = vsub.f32 %v511_v7, %v528_v48  ;;  %v545_v51 = vsub.f32 %v512_v15, %v531_v49 }
 0x2e0   :  { %2441 = vpow2.f32 %v551_v47 }
 0x2e1   :  { %v555_v53 = vmul.f32 1.442695, %v544_v50  ;;  %v557_v54 = vmul.f32 1.442695, %v545_v51 }
 0x2e2   :  { %v534_v55 = vpop.xlane.xlu0 %533  ;;  %v537_v56 = vpop.xlane.xlu1 %536 }
 0x2e3   :  { %2443 = vpow2.f32 %v555_v53  ;;  %v546_v52 = vsub.f32 %v513_v27, %v534_v55  ;;  %v547_v58 = vsub.f32 %v514_v26, %v537_v56  ;;  %v2407_v26 = vld [vmem:[%s3015_s2 + $0x68] sm:$0xff]   ;;  %v2408_v27 = vld [vmem:[%s3015_s2 + $0x60] sm:$0xff]  }
 0x2e4   :  { %2445 = vpow2.f32 %v557_v54 }
 0x2e5   :  { %v559_v59 = vmul.f32 1.442695, %v546_v52  ;;  %v561_v61 = vmul.f32 1.442695, %v547_v58 }
 0x2e6   :  { %v540_v57 = vpop.xlane.xlu0 %539 }
 0x2e7   :  { %2447 = vpow2.f32 %v559_v59  ;;  %v548_v62 = vsub.f32 %v515_v35, %v540_v57  ;;  %v2413_v35 = vld [vmem:[%s3017_s4 + $0x78] sm:$0xff]  }
 0x2e8   :  { %v2438_v0 = vpop.eup %2437  ;;  %2449 = vpow2.f32 %v561_v61  ;;  %2251 = vmatprep.subr.bf16.mxu0 %v2413_v35  ;;  %v1929_v61 = vld [vmem:[%s3018_s5] ss:$0 sm:$0xff] }
 0x2e9   :  { %v563_v1 = vmul.f32 1.442695, %v548_v62  ;;  %v565_v2 = vsel %vm516_vm11, %v2438_v0, 0.0  ;;  %2252 = vmatpush3.bf16.msra.mxu0 %v2413_v35 }
 0x2ea   :  { %566 = vadd.xlane.f32.xlu1 %v565_v2  ;;  %2253 = vmatprep.subr.bf16.mxu0 %v2414_v36 }
 0x2eb   :  { %2451 = vpow2.f32 %v563_v1 }
 0x2ec   :  { %v2440_v3 = vpop.eup %2439 }
 0x2ed   :  { %v2442_v4 = vpop.eup %2441  ;;  %v571_v5 = vsel %vm516_vm11, %v2440_v3, 0.0  ;;  %2254 = vmatpush3.bf16.msra.mxu0 %v2414_v36 }
 0x2ee   :  { %572 = vadd.xlane.f32.xlu1 %v571_v5  ;;  %v568_v6 = vsel %vm516_vm11, %v2442_v4, 0.0  ;;  %v597_v7 = vpack.c.bf16 %v2442_v4, %v2438_v0  ;;  %2255 = vmatprep.subr.bf16.mxu0 %v2415_v37 }
 0x2ef   :  { %569 = vadd.xlane.f32.xlu0 %v568_v6 }
 0x2f0   :  { %v2444_v8 = vpop.eup %2443  ;;  %2219 = vmatprep.mubr.msk.bf16.mxu1 %vm516_vm11, %v597_v7 }
 0x2f1   :  { %v2446_v9 = vpop.eup %2445  ;;  %v598_v10 = vpack.c.bf16 %v2444_v8, %v2440_v3  ;;  %v574_v12 = vsel %vm516_vm11, %v2444_v8, 0.0  ;;  %2256 = vmatpush3.bf16.msra.mxu0 %v2415_v37 }
 0x2f2   :  { %v577_v13 = vsel %vm516_vm11, %v2446_v9, 0.0  ;;  %2257 = vmatprep.subr.bf16.mxu0 %v2416_v38 }
 0x2f3   :  { %575 = vadd.xlane.f32.xlu0 %v574_v12  ;;  %578 = vadd.xlane.f32.xlu1 %v577_v13 }
 0x2f4   :  { %v2448_v29 = vpop.eup %2447  ;;  %2220 = vmatmul.mubr.msk.bf16.vlgmr.msra.gmra.mxu1 %vm516_vm11, %v598_v10 }
 0x2f5   :  { %v2450_v15 = vpop.eup %2449  ;;  %v580_v17 = vsel %vm516_vm11, %v2448_v29, 0.0  ;;  %v599_v19 = vpack.c.bf16 %v2448_v29, %v2446_v9  ;;  %2228 = vmatpush3.bf16.msra.mxu1 %v2405_v24  ;;  %2258 = vmatpush3.bf16.msra.mxu0 %v2416_v38 }
 0x2f6   :  { %v583_v20 = vsel %vm516_vm11, %v2450_v15, 0.0  ;;  %2229 = vmatprep.subr.bf16.mxu1 %v2406_v25  ;;  %2259 = vmatprep.subr.bf16.mxu0 %v2417_v40 }
 0x2f7   :  { %581 = vadd.xlane.f32.xlu0 %v580_v17  ;;  %584 = vadd.xlane.f32.xlu1 %v583_v20 }
 0x2f8   :  { %v2452_v21 = vpop.eup %2451  ;;  %2223 = vmatprep.mubr.msk.bf16.mxu1 %vm516_vm11, %v599_v19 }
 0x2f9   :  { %v586_v22 = vsel %vm516_vm11, %v2452_v21, 0.0  ;;  %v600_v23 = vpack.c.bf16 %v2452_v21, %v2450_v15  ;;  %2230 = vmatpush3.bf16.msra.mxu1 %v2406_v25  ;;  %2260 = vmatpush3.bf16.msra.mxu0 %v2417_v40 }
 0x2fa   :  { %2231 = vmatprep.subr.bf16.mxu1 %v2407_v26  ;;  %2261 = vmatprep.subr.bf16.mxu0 %v2418_v41 }
 0x2fb   :  { %587 = vadd.xlane.f32.xlu0 %v586_v22 }
 0x2fc   :  { %2224 = vmatmul.mubr.msk.bf16.gmra.mxu1 %vm516_vm11, %v600_v23 }
 0x2fd   :  { %2232 = vmatpush3.bf16.msra.mxu1 %v2407_v26  ;;  %2262 = vmatpush3.bf16.msra.mxu0 %v2418_v41  ;;  %v2419_v41 = vld [vmem:[%s3017_s4 + $0x48] sm:$0xff]  }
 0x2fe   :  { %2233 = vmatprep.subr.bf16.mxu1 %v2408_v27  ;;  %2263 = vmatprep.subr.bf16.mxu0 %v2419_v41 }
 0x301   :  { %2234 = vmatpush3.bf16.msra.mxu1 %v2408_v27  ;;  %2264 = vmatpush3.bf16.msra.mxu0 %v2419_v41 }
 0x302   :  { %2235 = vmatprep.subr.bf16.mxu1 %v2409_v31 }
 0x305   :  { %2236 = vmatpush3.bf16.msra.mxu1 %v2409_v31 }
 0x306   :  { %2237 = vmatprep.subr.bf16.mxu1 %v2410_v33 }
 0x309   :  { %2238 = vmatpush3.bf16.msra.mxu1 %v2410_v33 }
 0x30a   :  { %2239 = vmatprep.subr.bf16.mxu1 %v2411_v34 }
 0x30d   :  { %2240 = vmatpush3.bf16.msra.mxu1 %v2411_v34 }
 0x30e   :  { %2241 = vmatprep.subr.bf16.mxu1 %v2412_v18 }
 0x311   :  { %2242 = vmatpush3.bf16.msra.mxu1 %v2412_v18 }
 0x312   :  { %2275 = vmatprep.subr.bf16.mxu1 %v2603_v28 }
 0x373   :  { %v567_v42 = vpop.xlane.xlu1 %566 }
 0x374   :  { %2453 = vrcp.f32 %v567_v42  ;;  %v2420_v42 = vld [vmem:[%s3017_s4 + $0x40] sm:$0xff]  }
 0x375   :  { %2265 = vmatprep.subr.bf16.mxu0 %v2420_v42 }
 0x376   :  { %2266 = vmatpush3.bf16.msra.mxu0 %v2420_v42 }
 0x377   :  { %v573_v44 = vpop.xlane.xlu1 %572 }
 0x378   :  { %v570_v43 = vpop.xlane.xlu0 %569  ;;  %2455 = vrcp.f32 %v573_v44 }
 0x37c   :  { %v576_v46 = vpop.xlane.xlu0 %575  ;;  %v579_v47 = vpop.xlane.xlu1 %578 }
 0x37d   :  { %2457 = vrcp.f32 %v576_v46 }
 0x37e   :  { %2459 = vrcp.f32 %v570_v43 }
 0x37f   :  { %2461 = vrcp.f32 %v579_v47 }
 0x380   :  { %v582_v48 = vpop.xlane.xlu0 %581  ;;  %v585_v49 = vpop.xlane.xlu1 %584 }
 0x381   :  { %2463 = vrcp.f32 %v585_v49  ;;  %v2454_v53 = vpop.eup %2453 }
 0x384   :  { %v588_v50 = vpop.xlane.xlu0 %587 }
 0x385   :  { %2465 = vrcp.f32 %v588_v50  ;;  %v2456_v55 = vpop.eup %2455 }
 0x386   :  { %2467 = vrcp.f32 %v582_v48 }
 0x38a   :  { %v2458_v52 = vpop.eup %2457 }
 0x38b   :  { %v2460_v62 = vpop.eup %2459 }
 0x38c   :  { %v2462_v7 = vpop.eup %2461 }
 0x38e   :  { %v2464_v10 = vpop.eup %2463 }
 0x392   :  { %v2466_v15 = vpop.eup %2465 }
 0x393   :  { %v2468_v23 = vpop.eup %2467 }
 0x3b4   :  { %v2221_v51 = vpop.f32.mrf.mxu1 }
 0x3b5   :  { %v680_v58 = vmul.f32 %v2456_v55, %v2221_v51 }
 0x3b6   :  { %v647_v54 = vpop.f32.mrf.mxu1 }
 0x3b7   :  { %v678_v56 = vmul.f32 %v2454_v53, %v647_v54  ;;  %v695_v4 = vadd.f32 %v1929_v61, %v680_v58 }
 0x3b8   :  { %v2222_v59 = vpop.f32.mrf.mxu1 }
 0x3b9   :  { %v681_v57 = vmul.f32 %v2458_v52, %v2222_v59  ;;  %v693_v1 = vadd.f32 %v1929_v61, %v678_v56  ;;  %v703_v17 = vmax.f32 %v695_v4, 0.0  ;;  %v1978_v52 = vld [vmem:[%s3016_s3 + $0x1] sm:$0x1] }
 0x3ba   :  { %v650_v0 = vpop.f32.mrf.mxu1 }
 0x3bb   :  { %v696_v2 = vadd.f32 %v1929_v61, %v681_v57  ;;  %v679_v3 = vmul.f32 %v2460_v62, %v650_v0  ;;  %v701_v12 = vmax.f32 %v693_v1, 0.0 }
 0x3bc   :  { %v2225_v5 = vpop.f32.mrf.mxu1 }
 0x3bd   :  { %v694_v6 = vadd.f32 %v1929_v61, %v679_v3  ;;  %v704_v8 = vmax.f32 %v696_v2, 0.0  ;;  %v684_v19 = vmul.f32 %v2464_v10, %v2225_v5 }
 0x3be   :  { %v663_v9 = vpop.f32.mrf.mxu1 }
 0x3bf   :  { %v702_v13 = vmax.f32 %v694_v6, 0.0  ;;  %v682_v29 = vmul.f32 %v2462_v7, %v663_v9  ;;  %v710_v24 = vpack.c.bf16 %v704_v8, %v703_v17  ;;  %v699_v33 = vadd.f32 %v1929_v61, %v684_v19 }
 0x3c0   :  { %v2226_v20 = vpop.f32.mrf.mxu1 }
 0x3c1   :  { %v685_v21 = vmul.f32 %v2466_v15, %v2226_v20  ;;  %v709_v22 = vpack.c.bf16 %v702_v13, %v701_v12  ;;  %v697_v26 = vadd.f32 %v1929_v61, %v682_v29  ;;  %v707_v37 = vmax.f32 %v699_v33, 0.0 }
 0x3c2   :  { %v666_v25 = vpop.f32.mrf.mxu1 }
 0x3c3   :  { %v700_v27 = vadd.f32 %v1929_v61, %v685_v21  ;;  %v683_v31 = vmul.f32 %v2468_v23, %v666_v25  ;;  %2243 = vmatprep.mubr.bf16.mxu1 %v709_v22  ;;  %v705_v35 = vmax.f32 %v697_v26, 0.0 }
 0x3c4   :  { %2244 = vmatmul.mubr.bf16.vlgmr.msra.gmra.mxu1 %v710_v24 }
 0x3c5   :  { %v698_v34 = vadd.f32 %v1929_v61, %v683_v31  ;;  %v708_v18 = vmax.f32 %v700_v27, 0.0 }
 0x3c7   :  { %v706_v36 = vmax.f32 %v698_v34, 0.0  ;;  %v712_v40 = vpack.c.bf16 %v708_v18, %v707_v37 }
 0x3c9   :  { %v711_v38 = vpack.c.bf16 %v706_v36, %v705_v35 }
 0x3cb   :  { %2247 = vmatprep.mubr.bf16.mxu1 %v711_v38 }
 0x3cc   :  { %2248 = vmatmul.mubr.bf16.gmra.mxu1 %v712_v40 }
 0x3cd   :  { %2283 = vmatprep.mubr.msk.bf16.mxu1 %vm2604_vm0, %v2603_v28 }
 0x484   :  { %v2245_v43 = vpop.f32.mrf.mxu1 }
 0x486   :  { %v812_v44 = vpop.f32.mrf.mxu1 }
 0x488   :  { %v2246_v46 = vpop.f32.mrf.mxu1 }
 0x489   :  { %v844_v49 = vpack.c.bf16 %v2246_v46, %v2245_v43 }
 0x48a   :  { %v815_v47 = vpop.f32.mrf.mxu1 }
 0x48b   :  { %v843_v48 = vpack.c.bf16 %v815_v47, %v812_v44 }
 0x48c   :  { %v2249_v50 = vpop.f32.mrf.mxu1 }
 0x48d   :  { %2267 = vmatprep.mubr.bf16.mxu0 %v843_v48 }
 0x48e   :  { %v828_v51 = vpop.f32.mrf.mxu1  ;;  %2268 = vmatmul.mubr.bf16.vlgmr.msra.gmra.mxu0 %v844_v49 }
 0x490   :  { %v2250_v53 = vpop.f32.mrf.mxu1 }
 0x491   :  { %v846_v54 = vpack.c.bf16 %v2250_v53, %v2249_v50 }
 0x492   :  { %v831_v55 = vpop.f32.mrf.mxu1 }
 0x493   :  { %v845_v56 = vpack.c.bf16 %v831_v55, %v828_v51  ;;  %2276 = vmatpush3.bf16.xpose.msra.mxu1 %v846_v54  ;;  %2287 = vmatprep.subr.bf16.mxu0 %v846_v54 }
 0x494   :  { %2288 = vmatpush3.bf16.msra.mxu0 %v846_v54  ;;  %2277 = vmatprep.subr.bf16.mxu1 %v2603_v28 }
 0x495   :  { %2271 = vmatprep.mubr.bf16.mxu0 %v845_v56  ;;  %2289 = vmatprep.subr.bf16.mxu0 %v845_v56 }
 0x496   :  { %2272 = vmatmul.mubr.bf16.gmra.mxu0 %v846_v54 }
 0x498   :  { %2290 = vmatpush3.bf16.msra.mxu0 %v845_v56 }
 0x499   :  { %2291 = vmatprep.subr.bf16.mxu0 %v844_v49 }
 0x49b   :  { %2278 = vmatpush3.bf16.xpose.msra.mxu1 %v845_v56 }
 0x49c   :  { %2292 = vmatpush3.bf16.msra.mxu0 %v844_v49  ;;  %2279 = vmatprep.subr.bf16.mxu1 %v2603_v28 }
 0x49d   :  { %2293 = vmatprep.subr.bf16.mxu0 %v843_v48 }
 0x4a0   :  { %2294 = vmatpush3.bf16.msra.mxu0 %v843_v48 }
 0x4a3   :  { %2280 = vmatpush3.bf16.xpose.msra.mxu1 %v844_v49 }
 0x4a4   :  { %2281 = vmatprep.subr.bf16.mxu1 %v2603_v28 }
 0x4ab   :  { %2282 = vmatpush3.bf16.xpose.msra.mxu1 %v843_v48 }
 0x4b2   :  { %2284 = vmatmul.mubr.bf16.vlgmr.msra.gmra.mxu1 %v1978_v52 }
 0x54e   :  { %v2269_v58 = vpop.f32.mrf.mxu0 }
 0x550   :  { %v946_v59 = vpop.f32.mrf.mxu0 }
 0x551   :  { %1021 = vperm.xlu1 %2388, %v946_v59  }
 0x552   :  { %v2270_v61 = vpop.f32.mrf.mxu0 }
 0x554   :  { %v949_v57 = vpop.f32.mrf.mxu0 }
 0x555   :  { %1031 = vperm.xlu1 %2388, %v2269_v58   ;;  %1026 = vperm.xlu0 %2387, %v949_v57  }
 0x556   :  { %v2273_v62 = vpop.f32.mrf.mxu0 }
 0x558   :  { %v962_v0 = vpop.f32.mrf.mxu0 }
 0x559   :  { %1036 = vperm.xlu1 %2388, %v2270_v61   ;;  %1041 = vperm.xlu0 %2387, %v962_v0  }
 0x55a   :  { %v2274_v1 = vpop.f32.mrf.mxu0 }
 0x55c   :  { %v965_v2 = vpop.f32.mrf.mxu0 }
 0x55d   :  { %1051 = vperm.xlu0 %2387, %v2273_v62   ;;  %1046 = vperm.xlu1 %2388, %v965_v2  }
 0x561   :  { %1056 = vperm.xlu1 %2388, %v2274_v1  }
 0x572   :  { %v1013_v3 = vpop.f32.mrf.mxu1 }
 0x573   :  { %v1062_v7 = vrot.slane %v1013_v3, %v2715_v11 }
 0x574   :  { %v2285_v4 = vpop.f32.mrf.mxu1 }
 0x576   :  { %v1016_v5 = vpop.f32.mrf.mxu1 }
 0x578   :  { %v2286_v6 = vpop.f32.mrf.mxu1 }
 0x5cc   :  { %v1022_v8 = vpop.permute.xlu1 %1021 }
 0x5cd   :  { %v1063_v9 = vadd.f32 %v1062_v7, %v1022_v8 }
 0x5cf   :  { %v1079_v10 = vmul.f32 0.2, %v1063_v9  ;;  %vm1071_vm2 = vcmp.gt.f32.partialorder %v1063_v9, 0.0 }
 0x5d0   :  { %v1027_v12 = vpop.permute.xlu0 %1026  ;;  %v1032_v13 = vpop.permute.xlu1 %1031 }
 0x5d1   :  { %v1064_v29 = vadd.f32 %v1062_v7, %v1027_v12  ;;  %v1065_v15 = vadd.f32 %v1062_v7, %v1032_v13  ;;  %v1087_v17 = vsel %vm1071_vm2, %v1063_v9, %v1079_v10 }
 0x5d2   :  { %v1095_v19 = vsel %vm2731_vm10, %v1087_v17, -1e+30 }
 0x5d3   :  { %v1080_v20 = vmul.f32 0.2, %v1064_v29  ;;  %v1081_v21 = vmul.f32 0.2, %v1065_v15  ;;  %v1103_v22 = vsel %vm516_vm11, %v1095_v19, -inf  ;;  %vm1072_vm3 = vcmp.gt.f32.partialorder %v1064_v29, 0.0 }
 0x5d4   :  { %v1042_v23 = vpop.permute.xlu0 %1041  ;;  %1104 = vmax.xlane.f32.xlu0 %v1103_v22  ;;  %v1037_v24 = vpop.permute.xlu1 %1036  ;;  %vm1073_vm6 = vcmp.gt.f32.partialorder %v1065_v15, 0.0 }
 0x5d5   :  { %v1067_v25 = vadd.f32 %v1062_v7, %v1042_v23  ;;  %v1066_v26 = vadd.f32 %v1062_v7, %v1037_v24  ;;  %v1088_v27 = vsel %vm1072_vm3, %v1064_v29, %v1080_v20  ;;  %v1089_v31 = vsel %vm1073_vm6, %v1065_v15, %v1081_v21 }
 0x5d6   :  { %v1096_v33 = vsel %vm2736_vm15, %v1088_v27, -1e+30  ;;  %v1097_v34 = vsel %vm2724_vm8, %v1089_v31, -1e+30 }
 0x5d7   :  { %v1083_v18 = vmul.f32 0.2, %v1067_v25  ;;  %v1082_v35 = vmul.f32 0.2, %v1066_v26  ;;  %v1106_v36 = vsel %vm516_vm11, %v1096_v33, -inf  ;;  %v1109_v37 = vsel %vm516_vm11, %v1097_v34, -inf }
 0x5d8   :  { %v1052_v38 = vpop.permute.xlu0 %1051  ;;  %1107 = vmax.xlane.f32.xlu1 %v1106_v36  ;;  %1110 = vmax.xlane.f32.xlu0 %v1109_v37  ;;  %v1047_v40 = vpop.permute.xlu1 %1046  ;;  %vm1075_vm12 = vcmp.gt.f32.partialorder %v1067_v25, 0.0  ;;  %vm1074_vm13 = vcmp.gt.f32.partialorder %v1066_v26, 0.0 }
 0x5d9   :  { %v1069_v41 = vadd.f32 %v1062_v7, %v1052_v38  ;;  %v1068_v42 = vadd.f32 %v1062_v7, %v1047_v40  ;;  %v1091_v43 = vsel %vm1075_vm12, %v1067_v25, %v1083_v18  ;;  %v1090_v44 = vsel %vm1074_vm13, %v1066_v26, %v1082_v35 }
 0x5da   :  { %v1099_v46 = vsel %vm2757_vm5, %v1091_v43, -1e+30  ;;  %v1098_v47 = vsel %vm2752_vm4, %v1090_v44, -1e+30 }
 0x5db   :  { %v1085_v48 = vmul.f32 0.2, %v1069_v41  ;;  %v1084_v49 = vmul.f32 0.2, %v1068_v42  ;;  %v1115_v50 = vsel %vm516_vm11, %v1099_v46, -inf  ;;  %v1112_v51 = vsel %vm516_vm11, %v1098_v47, -inf }
 0x5dc   :  { %1116 = vmax.xlane.f32.xlu1 %v1115_v50  ;;  %1113 = vmax.xlane.f32.xlu0 %v1112_v51  ;;  %v1057_v53 = vpop.permute.xlu1 %1056  ;;  %vm1077_vm1 = vcmp.gt.f32.partialorder %v1069_v41, 0.0  ;;  %vm1076_vm2 = vcmp.gt.f32.partialorder %v1068_v42, 0.0 }
 0x5dd   :  { %v1070_v54 = vadd.f32 %v1062_v7, %v1057_v53  ;;  %v1093_v55 = vsel %vm1077_vm1, %v1069_v41, %v1085_v48  ;;  %v1092_v56 = vsel %vm1076_vm2, %v1068_v42, %v1084_v49 }
 0x5de   :  { %v1101_v52 = vsel %vm2772_vm7, %v1093_v55, -1e+30  ;;  %v1100_v58 = vsel %vm2779_vm9, %v1092_v56, -1e+30  ;;  %v2421_v55 = vld [vmem:[%s3015_s2 + $0xb8] sm:$0xff]   ;;  %v2422_v56 = vld [vmem:[%s3015_s2 + $0xb0] sm:$0xff]  }
 0x5df   :  { %v1086_v59 = vmul.f32 0.2, %v1070_v54  ;;  %v1121_v61 = vsel %vm516_vm11, %v1101_v52, -inf  ;;  %v1118_v57 = vsel %vm516_vm11, %v1100_v58, -inf  ;;  %vm1078_vm3 = vcmp.gt.f32.partialorder %v1070_v54, 0.0  ;;  %2303 = vmatprep.subr.bf16.mxu0 %v2421_v55 }
 0x5e0   :  { %1122 = vmax.xlane.f32.xlu1 %v1121_v61  ;;  %1119 = vmax.xlane.f32.xlu0 %v1118_v57  ;;  %v2426_v61 = vld [vmem:[%s3015_s2 + $0x90] sm:$0xff]   ;;  %v2427_v57 = vld [vmem:[%s3015_s2 + $0x88] sm:$0xff]  }
 0x5e1   :  { %v1094_v62 = vsel %vm1078_vm3, %v1070_v54, %v1086_v59  ;;  %v2425_v59 = vld [vmem:[%s3015_s2 + $0x98] sm:$0xff]  }
 0x5e2   :  { %v1102_v0 = vsel %vm2789_vm14, %v1094_v62, -1e+30  ;;  %v2428_v62 = vld [vmem:[%s3015_s2 + $0x80] sm:$0xff]  }
 0x5e3   :  { %v1124_v1 = vsel %vm516_vm11, %v1102_v0, -inf }
 0x5e4   :  { %1125 = vmax.xlane.f32.xlu0 %v1124_v1  ;;  %v2430_v1 = vld [vmem:[%s3017_s4 + $0xb0] sm:$0xff]  }
 0x65d   :  { %v1105_v2 = vpop.xlane.xlu0 %1104 }
 0x65e   :  { %v1127_v3 = vsub.f32 %v1095_v19, %v1105_v2  ;;  %v2431_v2 = vld [vmem:[%s3017_s4 + $0xa8] sm:$0xff]  }
 0x660   :  { %v1135_v4 = vmul.f32 1.442695, %v1127_v3  ;;  %v2432_v3 = vld [vmem:[%s3017_s4 + $0xa0] sm:$0xff]  }
 0x661   :  { %v1111_v5 = vpop.xlane.xlu0 %1110  ;;  %v1108_v6 = vpop.xlane.xlu1 %1107 }
 0x662   :  { %2469 = vpow2.f32 %v1135_v4  ;;  %v1129_v7 = vsub.f32 %v1097_v34, %v1111_v5  ;;  %v1128_v8 = vsub.f32 %v1096_v33, %v1108_v6  ;;  %v2433_v4 = vld [vmem:[%s3017_s4 + $0x98] sm:$0xff]   ;;  %v2434_v5 = vld [vmem:[%s3017_s4 + $0x90] sm:$0xff]  }
 0x664   :  { %v1139_v9 = vmul.f32 1.442695, %v1129_v7  ;;  %v1137_v10 = vmul.f32 1.442695, %v1128_v8 }
 0x665   :  { %v1114_v12 = vpop.xlane.xlu0 %1113  ;;  %v1117_v13 = vpop.xlane.xlu1 %1116 }
 0x666   :  { %2471 = vpow2.f32 %v1139_v9  ;;  %v1130_v29 = vsub.f32 %v1098_v47, %v1114_v12  ;;  %v1131_v15 = vsub.f32 %v1099_v46, %v1117_v13 }
 0x667   :  { %2473 = vpow2.f32 %v1137_v10 }
 0x668   :  { %v1141_v17 = vmul.f32 1.442695, %v1130_v29  ;;  %v1143_v20 = vmul.f32 1.442695, %v1131_v15 }
 0x669   :  { %v1120_v21 = vpop.xlane.xlu0 %1119  ;;  %v1123_v22 = vpop.xlane.xlu1 %1122 }
 0x66a   :  { %2475 = vpow2.f32 %v1141_v17  ;;  %v1132_v19 = vsub.f32 %v1100_v58, %v1120_v21  ;;  %v1133_v23 = vsub.f32 %v1101_v52, %v1123_v22  ;;  %v2423_v52 = vld [vmem:[%s3015_s2 + $0xa8] sm:$0xff]   ;;  %v2424_v58 = vld [vmem:[%s3015_s2 + $0xa0] sm:$0xff]  }
 0x66b   :  { %2477 = vpow2.f32 %v1143_v20 }
 0x66c   :  { %v1145_v24 = vmul.f32 1.442695, %v1132_v19  ;;  %v1147_v25 = vmul.f32 1.442695, %v1133_v23 }
 0x66d   :  { %v1126_v26 = vpop.xlane.xlu0 %1125 }
 0x66e   :  { %2479 = vpow2.f32 %v1145_v24  ;;  %v1134_v27 = vsub.f32 %v1102_v0, %v1126_v26  ;;  %v2429_v0 = vld [vmem:[%s3017_s4 + $0xb8] sm:$0xff]  }
 0x66f   :  { %v2470_v31 = vpop.eup %2469  ;;  %2481 = vpow2.f32 %v1147_v25  ;;  %2327 = vmatprep.subr.bf16.mxu1 %v2429_v0  ;;  %v1984_v25 = vld [vmem:[%s3018_s5 + $0x1] ss:$0 sm:$0xff] }
 0x670   :  { %v1149_v33 = vmul.f32 1.442695, %v1134_v27  ;;  %v1151_v34 = vsel %vm516_vm11, %v2470_v31, 0.0  ;;  %2328 = vmatpush3.bf16.msra.mxu1 %v2429_v0 }
 0x671   :  { %1152 = vadd.xlane.f32.xlu1 %v1151_v34  ;;  %2329 = vmatprep.subr.bf16.mxu1 %v2430_v1 }
 0x672   :  { %2483 = vpow2.f32 %v1149_v33 }
 0x673   :  { %v2472_v18 = vpop.eup %2471 }
 0x674   :  { %v2474_v35 = vpop.eup %2473  ;;  %v1157_v36 = vsel %vm516_vm11, %v2472_v18, 0.0  ;;  %2330 = vmatpush3.bf16.msra.mxu1 %v2430_v1 }
 0x675   :  { %1158 = vadd.xlane.f32.xlu1 %v1157_v36  ;;  %v1154_v37 = vsel %vm516_vm11, %v2474_v35, 0.0  ;;  %v1183_v38 = vpack.c.bf16 %v2474_v35, %v2470_v31  ;;  %2331 = vmatprep.subr.bf16.mxu1 %v2431_v2 }
 0x676   :  { %1155 = vadd.xlane.f32.xlu0 %v1154_v37 }
 0x677   :  { %v2476_v40 = vpop.eup %2475  ;;  %2295 = vmatprep.mubr.msk.bf16.mxu0 %vm516_vm11, %v1183_v38 }
 0x678   :  { %v2478_v41 = vpop.eup %2477  ;;  %v1184_v42 = vpack.c.bf16 %v2476_v40, %v2472_v18  ;;  %v1160_v43 = vsel %vm516_vm11, %v2476_v40, 0.0  ;;  %2332 = vmatpush3.bf16.msra.mxu1 %v2431_v2 }
 0x679   :  { %v1163_v44 = vsel %vm516_vm11, %v2478_v41, 0.0  ;;  %2333 = vmatprep.subr.bf16.mxu1 %v2432_v3 }
 0x67a   :  { %1161 = vadd.xlane.f32.xlu0 %v1160_v43  ;;  %1164 = vadd.xlane.f32.xlu1 %v1163_v44 }
 0x67b   :  { %v2480_v46 = vpop.eup %2479  ;;  %2296 = vmatmul.mubr.msk.bf16.vlgmr.msra.gmra.mxu0 %vm516_vm11, %v1184_v42 }
 0x67c   :  { %v2482_v47 = vpop.eup %2481  ;;  %v1166_v48 = vsel %vm516_vm11, %v2480_v46, 0.0  ;;  %v1185_v49 = vpack.c.bf16 %v2480_v46, %v2478_v41  ;;  %2304 = vmatpush3.bf16.msra.mxu0 %v2421_v55  ;;  %2334 = vmatpush3.bf16.msra.mxu1 %v2432_v3 }
 0x67d   :  { %v1169_v50 = vsel %vm516_vm11, %v2482_v47, 0.0  ;;  %2305 = vmatprep.subr.bf16.mxu0 %v2422_v56  ;;  %2335 = vmatprep.subr.bf16.mxu1 %v2433_v4 }
 0x67e   :  { %1167 = vadd.xlane.f32.xlu0 %v1166_v48  ;;  %1170 = vadd.xlane.f32.xlu1 %v1169_v50 }
 0x67f   :  { %v2484_v51 = vpop.eup %2483  ;;  %2299 = vmatprep.mubr.msk.bf16.mxu0 %vm516_vm11, %v1185_v49 }
 0x680   :  { %v1172_v53 = vsel %vm516_vm11, %v2484_v51, 0.0  ;;  %v1186_v54 = vpack.c.bf16 %v2484_v51, %v2482_v47  ;;  %2306 = vmatpush3.bf16.msra.mxu0 %v2422_v56  ;;  %2336 = vmatpush3.bf16.msra.mxu1 %v2433_v4 }
 0x681   :  { %2307 = vmatprep.subr.bf16.mxu0 %v2423_v52  ;;  %2337 = vmatprep.subr.bf16.mxu1 %v2434_v5 }
 0x682   :  { %1173 = vadd.xlane.f32.xlu0 %v1172_v53 }
 0x683   :  { %2300 = vmatmul.mubr.msk.bf16.gmra.mxu0 %vm516_vm11, %v1186_v54 }
 0x684   :  { %2308 = vmatpush3.bf16.msra.mxu0 %v2423_v52  ;;  %2338 = vmatpush3.bf16.msra.mxu1 %v2434_v5  ;;  %v2435_v5 = vld [vmem:[%s3017_s4 + $0x88] sm:$0xff]  }
 0x685   :  { %2309 = vmatprep.subr.bf16.mxu0 %v2424_v58  ;;  %2339 = vmatprep.subr.bf16.mxu1 %v2435_v5 }
 0x688   :  { %2310 = vmatpush3.bf16.msra.mxu0 %v2424_v58  ;;  %2340 = vmatpush3.bf16.msra.mxu1 %v2435_v5 }
 0x689   :  { %2311 = vmatprep.subr.bf16.mxu0 %v2425_v59 }
 0x68c   :  { %2312 = vmatpush3.bf16.msra.mxu0 %v2425_v59 }
 0x68d   :  { %2313 = vmatprep.subr.bf16.mxu0 %v2426_v61 }
 0x690   :  { %2314 = vmatpush3.bf16.msra.mxu0 %v2426_v61 }
 0x691   :  { %2315 = vmatprep.subr.bf16.mxu0 %v2427_v57 }
 0x694   :  { %2316 = vmatpush3.bf16.msra.mxu0 %v2427_v57 }
 0x695   :  { %2317 = vmatprep.subr.bf16.mxu0 %v2428_v62 }
 0x698   :  { %2318 = vmatpush3.bf16.msra.mxu0 %v2428_v62 }
 0x699   :  { %2351 = vmatprep.subr.bf16.mxu0 %v2603_v28 }
 0x6fa   :  { %v1153_v6 = vpop.xlane.xlu1 %1152 }
 0x6fb   :  { %2485 = vrcp.f32 %v1153_v6  ;;  %v2436_v6 = vld [vmem:[%s3017_s4 + $0x80] sm:$0xff]  }
 0x6fc   :  { %2341 = vmatprep.subr.bf16.mxu1 %v2436_v6 }
 0x6fd   :  { %2342 = vmatpush3.bf16.msra.mxu1 %v2436_v6 }
 0x6fe   :  { %v1159_v8 = vpop.xlane.xlu1 %1158 }
 0x6ff   :  { %v1156_v7 = vpop.xlane.xlu0 %1155  ;;  %2487 = vrcp.f32 %v1159_v8 }
 0x703   :  { %v1162_v9 = vpop.xlane.xlu0 %1161  ;;  %v1165_v10 = vpop.xlane.xlu1 %1164 }
 0x704   :  { %2489 = vrcp.f32 %v1162_v9 }
 0x705   :  { %2491 = vrcp.f32 %v1156_v7 }
 0x706   :  { %2493 = vrcp.f32 %v1165_v10 }
 0x707   :  { %v1168_v12 = vpop.xlane.xlu0 %1167  ;;  %v1171_v13 = vpop.xlane.xlu1 %1170 }
 0x708   :  { %2495 = vrcp.f32 %v1171_v13  ;;  %v2486_v17 = vpop.eup %2485 }
 0x70b   :  { %v1174_v29 = vpop.xlane.xlu0 %1173 }
 0x70c   :  { %2497 = vrcp.f32 %v1174_v29  ;;  %v2488_v21 = vpop.eup %2487 }
 0x70d   :  { %2499 = vrcp.f32 %v1168_v12 }
 0x711   :  { %v2490_v19 = vpop.eup %2489 }
 0x712   :  { %v2492_v27 = vpop.eup %2491 }
 0x713   :  { %v2494_v38 = vpop.eup %2493 }
 0x715   :  { %v2496_v42 = vpop.eup %2495 }
 0x719   :  { %v2498_v47 = vpop.eup %2497 }
 0x71a   :  { %v2500_v54 = vpop.eup %2499 }
 0x73b   :  { %v2297_v15 = vpop.f32.mrf.mxu0 }
 0x73c   :  { %v1266_v23 = vmul.f32 %v2488_v21, %v2297_v15 }
 0x73d   :  { %v1233_v20 = vpop.f32.mrf.mxu0 }
 0x73e   :  { %v1264_v22 = vmul.f32 %v2486_v17, %v1233_v20  ;;  %v1282_v35 = vadd.f32 %v1984_v25, %v1266_v23 }
 0x73f   :  { %v2298_v24 = vpop.f32.mrf.mxu0 }
 0x740   :  { %v1267_v26 = vmul.f32 %v2490_v19, %v2298_v24  ;;  %v1280_v33 = vadd.f32 %v1984_v25, %v1264_v22  ;;  %v1290_v48 = vmax.f32 %v1282_v35, 0.0  ;;  %v2033_v19 = vld [vmem:[%s3016_s3 + $0x2] sm:$0x1] }
 0x741   :  { %v1236_v31 = vpop.f32.mrf.mxu0 }
 0x742   :  { %v1283_v34 = vadd.f32 %v1984_v25, %v1267_v26  ;;  %v1265_v18 = vmul.f32 %v2492_v27, %v1236_v31  ;;  %v1288_v43 = vmax.f32 %v1280_v33, 0.0 }
 0x743   :  { %v2301_v36 = vpop.f32.mrf.mxu0 }
 0x744   :  { %v1281_v37 = vadd.f32 %v1984_v25, %v1265_v18  ;;  %v1291_v40 = vmax.f32 %v1283_v34, 0.0  ;;  %v1270_v49 = vmul.f32 %v2496_v42, %v2301_v36 }
 0x745   :  { %v1249_v41 = vpop.f32.mrf.mxu0 }
 0x746   :  { %v1289_v44 = vmax.f32 %v1281_v37, 0.0  ;;  %v1268_v46 = vmul.f32 %v2494_v38, %v1249_v41  ;;  %v1297_v55 = vpack.c.bf16 %v1291_v40, %v1290_v48  ;;  %v1286_v61 = vadd.f32 %v1984_v25, %v1270_v49 }
 0x747   :  { %v2302_v50 = vpop.f32.mrf.mxu0 }
 0x748   :  { %v1271_v51 = vmul.f32 %v2498_v47, %v2302_v50  ;;  %v1296_v53 = vpack.c.bf16 %v1289_v44, %v1288_v43  ;;  %v1284_v52 = vadd.f32 %v1984_v25, %v1268_v46  ;;  %v1294_v2 = vmax.f32 %v1286_v61, 0.0 }
 0x749   :  { %v1252_v56 = vpop.f32.mrf.mxu0 }
 0x74a   :  { %v1287_v58 = vadd.f32 %v1984_v25, %v1271_v51  ;;  %v1269_v59 = vmul.f32 %v2500_v54, %v1252_v56  ;;  %2319 = vmatprep.mubr.bf16.mxu0 %v1296_v53  ;;  %v1292_v0 = vmax.f32 %v1284_v52, 0.0 }
 0x74b   :  { %2320 = vmatmul.mubr.bf16.vlgmr.msra.gmra.mxu0 %v1297_v55 }
 0x74c   :  { %v1285_v57 = vadd.f32 %v1984_v25, %v1269_v59  ;;  %v1295_v62 = vmax.f32 %v1287_v58, 0.0 }
 0x74e   :  { %v1293_v1 = vmax.f32 %v1285_v57, 0.0  ;;  %v1299_v4 = vpack.c.bf16 %v1295_v62, %v1294_v2 }
 0x750   :  { %v1298_v3 = vpack.c.bf16 %v1293_v1, %v1292_v0 }
 0x752   :  { %2323 = vmatprep.mubr.bf16.mxu0 %v1298_v3 }
 0x753   :  { %2324 = vmatmul.mubr.bf16.gmra.mxu0 %v1299_v4 }
 0x754   :  { %2359 = vmatprep.mubr.msk.bf16.mxu0 %vm2604_vm0, %v2603_v28 }
 0x80b   :  { %v2321_v7 = vpop.f32.mrf.mxu0 }
 0x80d   :  { %v1399_v8 = vpop.f32.mrf.mxu0 }
 0x80f   :  { %v2322_v9 = vpop.f32.mrf.mxu0 }
 0x810   :  { %v1431_v13 = vpack.c.bf16 %v2322_v9, %v2321_v7 }
 0x811   :  { %v1402_v10 = vpop.f32.mrf.mxu0 }
 0x812   :  { %v1430_v12 = vpack.c.bf16 %v1402_v10, %v1399_v8 }
 0x813   :  { %v2325_v29 = vpop.f32.mrf.mxu0 }
 0x814   :  { %2343 = vmatprep.mubr.bf16.mxu1 %v1430_v12 }
 0x815   :  { %v1415_v15 = vpop.f32.mrf.mxu0  ;;  %2344 = vmatmul.mubr.bf16.vlgmr.msra.gmra.mxu1 %v1431_v13 }
 0x817   :  { %v2326_v17 = vpop.f32.mrf.mxu0 }
 0x818   :  { %v1433_v20 = vpack.c.bf16 %v2326_v17, %v2325_v29 }
 0x819   :  { %v1418_v21 = vpop.f32.mrf.mxu0 }
 0x81a   :  { %v1432_v22 = vpack.c.bf16 %v1418_v21, %v1415_v15  ;;  %2352 = vmatpush3.bf16.xpose.msra.mxu0 %v1433_v20  ;;  %2363 = vmatprep.subr.bf16.mxu1 %v1433_v20 }
 0x81b   :  { %2364 = vmatpush3.bf16.msra.mxu1 %v1433_v20  ;;  %2353 = vmatprep.subr.bf16.mxu0 %v2603_v28 }
 0x81c   :  { %2347 = vmatprep.mubr.bf16.mxu1 %v1432_v22  ;;  %2365 = vmatprep.subr.bf16.mxu1 %v1432_v22 }
 0x81d   :  { %2348 = vmatmul.mubr.bf16.gmra.mxu1 %v1433_v20 }
 0x81f   :  { %2366 = vmatpush3.bf16.msra.mxu1 %v1432_v22 }
 0x820   :  { %2367 = vmatprep.subr.bf16.mxu1 %v1431_v13 }
 0x822   :  { %2354 = vmatpush3.bf16.xpose.msra.mxu0 %v1432_v22 }
 0x823   :  { %2368 = vmatpush3.bf16.msra.mxu1 %v1431_v13  ;;  %2355 = vmatprep.subr.bf16.mxu0 %v2603_v28 }
 0x824   :  { %2369 = vmatprep.subr.bf16.mxu1 %v1430_v12 }
 0x827   :  { %2370 = vmatpush3.bf16.msra.mxu1 %v1430_v12 }
 0x82a   :  { %2356 = vmatpush3.bf16.xpose.msra.mxu0 %v1431_v13 }
 0x82b   :  { %2357 = vmatprep.subr.bf16.mxu0 %v2603_v28 }
 0x832   :  { %2358 = vmatpush3.bf16.xpose.msra.mxu0 %v1430_v12 }
 0x839   :  { %2360 = vmatmul.mubr.bf16.vlgmr.msra.gmra.mxu0 %v2033_v19 }
 0x8d5   :  { %v2345_v23 = vpop.f32.mrf.mxu1 }
 0x8d7   :  { %v1533_v24 = vpop.f32.mrf.mxu1 }
 0x8d8   :  { %1608 = vperm.xlu1 %2388, %v1533_v24  }
 0x8d9   :  { %v2346_v25 = vpop.f32.mrf.mxu1 }
 0x8db   :  { %v1536_v26 = vpop.f32.mrf.mxu1 }
 0x8dc   :  { %1618 = vperm.xlu1 %2388, %v2345_v23   ;;  %1613 = vperm.xlu0 %2387, %v1536_v26  }
 0x8dd   :  { %v2349_v27 = vpop.f32.mrf.mxu1 }
 0x8df   :  { %v1549_v31 = vpop.f32.mrf.mxu1 }
 0x8e0   :  { %1623 = vperm.xlu1 %2388, %v2346_v25   ;;  %1628 = vperm.xlu0 %2387, %v1549_v31  }
 0x8e1   :  { %v2350_v33 = vpop.f32.mrf.mxu1 }
 0x8e3   :  { %v1552_v34 = vpop.f32.mrf.mxu1 }
 0x8e4   :  { %1638 = vperm.xlu0 %2387, %v2349_v27   ;;  %1633 = vperm.xlu1 %2388, %v1552_v34  }
 0x8e8   :  { %1643 = vperm.xlu1 %2388, %v2350_v33  }
 0x8f9   :  { %v1600_v28 = vpop.f32.mrf.mxu0 }
 0x8fa   :  { %v1649_v37 = vrot.slane %v1600_v28, %v2715_v11 }
 0x8fb   :  { %v2361_v18 = vpop.f32.mrf.mxu0 }
 0x8fd   :  { %v1603_v35 = vpop.f32.mrf.mxu0 }
 0x8ff   :  { %v2362_v36 = vpop.f32.mrf.mxu0 }
 0x953   :  { %v1609_v38 = vpop.permute.xlu1 %1608 }
 0x954   :  { %v1650_v40 = vadd.f32 %v1649_v37, %v1609_v38 }
 0x956   :  { %v1666_v41 = vmul.f32 0.2, %v1650_v40  ;;  %vm1658_vm0 = vcmp.gt.f32.partialorder %v1650_v40, 0.0 }
 0x957   :  { %v1614_v42 = vpop.permute.xlu0 %1613  ;;  %v1619_v43 = vpop.permute.xlu1 %1618 }
 0x958   :  { %v1651_v44 = vadd.f32 %v1649_v37, %v1614_v42  ;;  %v1652_v46 = vadd.f32 %v1649_v37, %v1619_v43  ;;  %v1674_v47 = vsel %vm1658_vm0, %v1650_v40, %v1666_v41 }
 0x959   :  { %v1682_v48 = vsel %vm2731_vm10, %v1674_v47, -1e+30 }
 0x95a   :  { %v1667_v49 = vmul.f32 0.2, %v1651_v44  ;;  %v1668_v50 = vmul.f32 0.2, %v1652_v46  ;;  %v1690_v51 = vsel %vm516_vm11, %v1682_v48, -inf  ;;  %vm1659_vm6 = vcmp.gt.f32.partialorder %v1651_v44, 0.0 }
 0x95b   :  { %v1629_v53 = vpop.permute.xlu0 %1628  ;;  %1691 = vmax.xlane.f32.xlu0 %v1690_v51  ;;  %v1624_v11 = vpop.permute.xlu1 %1623  ;;  %vm1660_vm12 = vcmp.gt.f32.partialorder %v1652_v46, 0.0 }
 0x95c   :  { %v1654_v54 = vadd.f32 %v1649_v37, %v1629_v53  ;;  %v1653_v55 = vadd.f32 %v1649_v37, %v1624_v11  ;;  %v1675_v56 = vsel %vm1659_vm6, %v1651_v44, %v1667_v49  ;;  %v1676_v52 = vsel %vm1660_vm12, %v1652_v46, %v1668_v50 }
 0x95d   :  { %v1683_v58 = vsel %vm2736_vm15, %v1675_v56, -1e+30  ;;  %v1684_v39 = vsel %vm2724_vm8, %v1676_v52, -1e+30 }
 0x95e   :  { %v1670_v59 = vmul.f32 0.2, %v1654_v54  ;;  %v1669_v61 = vmul.f32 0.2, %v1653_v55  ;;  %v1693_v57 = vsel %vm516_vm11, %v1683_v58, -inf  ;;  %v1696_v62 = vsel %vm516_vm11, %v1684_v39, -inf }
 0x95f   :  { %v1639_v0 = vpop.permute.xlu0 %1638  ;;  %1694 = vmax.xlane.f32.xlu1 %v1693_v57  ;;  %1697 = vmax.xlane.f32.xlu0 %v1696_v62  ;;  %v1634_v1 = vpop.permute.xlu1 %1633  ;;  %vm1662_vm10 = vcmp.gt.f32.partialorder %v1654_v54, 0.0  ;;  %vm1661_vm13 = vcmp.gt.f32.partialorder %v1653_v55, 0.0 }
 0x960   :  { %v1656_v2 = vadd.f32 %v1649_v37, %v1639_v0  ;;  %v1655_v3 = vadd.f32 %v1649_v37, %v1634_v1  ;;  %v1678_v4 = vsel %vm1662_vm10, %v1654_v54, %v1670_v59  ;;  %v1677_v45 = vsel %vm1661_vm13, %v1653_v55, %v1669_v61 }
 0x961   :  { %v1686_v32 = vsel %vm2757_vm5, %v1678_v4, -1e+30  ;;  %v1685_v5 = vsel %vm2752_vm4, %v1677_v45, -1e+30 }
 0x962   :  { %v1672_v6 = vmul.f32 0.2, %v1656_v2  ;;  %v1671_v7 = vmul.f32 0.2, %v1655_v3  ;;  %v1702_v8 = vsel %vm516_vm11, %v1686_v32, -inf  ;;  %v1699_v9 = vsel %vm516_vm11, %v1685_v5, -inf }
 0x963   :  { %1703 = vmax.xlane.f32.xlu1 %v1702_v8  ;;  %1700 = vmax.xlane.f32.xlu0 %v1699_v9  ;;  %v1644_v10 = vpop.permute.xlu1 %1643  ;;  %vm1664_vm8 = vcmp.gt.f32.partialorder %v1656_v2, 0.0  ;;  %vm1663_vm15 = vcmp.gt.f32.partialorder %v1655_v3, 0.0 }
 0x964   :  { %v1657_v12 = vadd.f32 %v1649_v37, %v1644_v10  ;;  %v1680_v13 = vsel %vm1664_vm8, %v1656_v2, %v1672_v6  ;;  %v1679_v29 = vsel %vm1663_vm15, %v1655_v3, %v1671_v7 }
 0x965   :  { %v1688_v63 = vsel %vm2772_vm7, %v1680_v13, -1e+30  ;;  %v1687_v60 = vsel %vm2779_vm9, %v1679_v29, -1e+30  ;;  %v2039_v13 = vld [vmem:[%s3018_s5 + $0x2] ss:$0 sm:$0xff] }
 0x966   :  { %v1673_v15 = vmul.f32 0.2, %v1657_v12  ;;  %v1708_v17 = vsel %vm516_vm11, %v1688_v63, -inf  ;;  %v1705_v20 = vsel %vm516_vm11, %v1687_v60, -inf  ;;  %vm1665_vm4 = vcmp.gt.f32.partialorder %v1657_v12, 0.0  ;;  %s2606_s5 = smov [#allocation7]  }
 0x967   :  { %1709 = vmax.xlane.f32.xlu1 %v1708_v17  ;;  %1706 = vmax.xlane.f32.xlu0 %v1705_v20  ;;  %s1896_s16 = sshll.u32 %s2606_s5, 4  ;;  %s1897_s16 = int_to_ptr.vmem [resolvable:$true] %s1896_s16 }
 0x968   :  { %v1681_v21 = vsel %vm1665_vm4, %v1657_v12, %v1673_v15  ;;  %s2573_s17 = scalar_lea.vmem %s1897_s16, 1024  ;;  %p2578_p11 = scmp.lt.s32.totalorder %s1897_s16, %s1897_s16 }
 0x969   :  { %v1689_v22 = vsel %vm2789_vm14, %v1681_v21, -1e+30  ;;  %p2574_p10 = scmp.ne.s32.totalorder %s1897_s16, %s2573_s17  ;;  %p2579_p12 = scmp.lt.s32.totalorder %s2573_s17, %s2573_s17 }
 0x96a   :  { %v1711_v19 = vsel %vm516_vm11, %v1689_v22, -inf }
 0x96b   :  { %1712 = vmax.xlane.f32.xlu0 %v1711_v19  ;;  %p2580_p13 = por %p2579_p12, %p2578_p11 }
 0x96d   :  { %p2581_p0 = pnand %p2580_p13, %p2574_p10 }
 0x9e4   :  { %v1692_v14 = vpop.xlane.xlu0 %1691 }
 0x9e5   :  { %v1714_v23 = vsub.f32 %v1682_v48, %v1692_v14 }
 0x9e7   :  { %v1722_v24 = vmul.f32 1.442695, %v1714_v23 }
 0x9e8   :  { %v1698_v16 = vpop.xlane.xlu0 %1697  ;;  %v1695_v25 = vpop.xlane.xlu1 %1694 }
 0x9e9   :  { %v1716_v26 = vsub.f32 %v1684_v39, %v1698_v16  ;;  %v1715_v27 = vsub.f32 %v1683_v58, %v1695_v25  ;;  %2501 = vpow2.f32 %v1722_v24 }
 0x9eb   :  { %v1726_v31 = vmul.f32 1.442695, %v1716_v26  ;;  %v1724_v33 = vmul.f32 1.442695, %v1715_v27 }
 0x9ec   :  { %v1701_v34 = vpop.xlane.xlu0 %1700  ;;  %v1704_v28 = vpop.xlane.xlu1 %1703 }
 0x9ed   :  { %2503 = vpow2.f32 %v1726_v31  ;;  %v1717_v18 = vsub.f32 %v1685_v5, %v1701_v34  ;;  %v1718_v35 = vsub.f32 %v1686_v32, %v1704_v28 }
 0x9ee   :  { %2505 = vpow2.f32 %v1724_v33 }
 0x9ef   :  { %v1728_v30 = vmul.f32 1.442695, %v1717_v18  ;;  %v1730_v36 = vmul.f32 1.442695, %v1718_v35 }
 0x9f0   :  { %v1707_v37 = vpop.xlane.xlu0 %1706  ;;  %v1710_v38 = vpop.xlane.xlu1 %1709 }
 0x9f1   :  { %2507 = vpow2.f32 %v1728_v30  ;;  %v1719_v40 = vsub.f32 %v1687_v60, %v1707_v37  ;;  %v1720_v41 = vsub.f32 %v1688_v63, %v1710_v38 }
 0x9f2   :  { %2509 = vpow2.f32 %v1730_v36 }
 0x9f3   :  { %v1732_v42 = vmul.f32 1.442695, %v1719_v40  ;;  %v1734_v43 = vmul.f32 1.442695, %v1720_v41 }
 0x9f4   :  { %v1713_v44 = vpop.xlane.xlu0 %1712 }
 0x9f5   :  { %2511 = vpow2.f32 %v1732_v42  ;;  %v1721_v46 = vsub.f32 %v1689_v22, %v1713_v44 }
 0x9f6   :  { %2513 = vpow2.f32 %v1734_v43  ;;  %v2502_v48 = vpop.eup %2501 }
 0x9f7   :  { %v1736_v47 = vmul.f32 1.442695, %v1721_v46  ;;  %v1738_v55 = vsel %vm516_vm11, %v2502_v48, 0.0 }
 0x9f9   :  { %2515 = vpow2.f32 %v1736_v47 }
 0x9fa   :  { %v2504_v49 = vpop.eup %2503 }
 0x9fb   :  { %v2506_v50 = vpop.eup %2505  ;;  %v1744_v51 = vsel %vm516_vm11, %v2504_v49, 0.0 }
 0x9fc   :  { %1745 = vadd.xlane.f32.xlu1 %v1744_v51  ;;  %v1770_v53 = vpack.c.bf16 %v2506_v50, %v2502_v48  ;;  %v1741_v39 = vsel %vm516_vm11, %v2506_v50, 0.0 }
 0x9fe   :  { %v2508_v11 = vpop.eup %2507  ;;  %2371 = vmatprep.mubr.msk.bf16.mxu1 %vm516_vm11, %v1770_v53 }
 0x9ff   :  { %v1771_v54 = vpack.c.bf16 %v2508_v11, %v2504_v49  ;;  %v1747_v56 = vsel %vm516_vm11, %v2508_v11, 0.0  ;;  %v2510_v52 = vpop.eup %2509 }
 0xa00   :  { %1739 = vadd.xlane.f32.xlu1 %v1738_v55  ;;  %1748 = vadd.xlane.f32.xlu0 %v1747_v56  ;;  %v1750_v59 = vsel %vm516_vm11, %v2510_v52, 0.0 }
 0xa01   :  { %2372 = vmatmul.mubr.msk.bf16.vlgmr.msra.gmra.mxu1 %vm516_vm11, %v1771_v54 }
 0xa02   :  { %v2512_v58 = vpop.eup %2511 }
 0xa03   :  { %v1772_v61 = vpack.c.bf16 %v2512_v58, %v2510_v52  ;;  %v2514_v57 = vpop.eup %2513  ;;  %v1753_v0 = vsel %vm516_vm11, %v2512_v58, 0.0 }
 0xa04   :  { %1742 = vadd.xlane.f32.xlu0 %v1741_v39  ;;  %1751 = vadd.xlane.f32.xlu1 %v1750_v59  ;;  %v1756_v1 = vsel %vm516_vm11, %v2514_v57, 0.0 }
 0xa05   :  { %2375 = vmatprep.mubr.msk.bf16.mxu1 %vm516_vm11, %v1772_v61 }
 0xa06   :  { %v2516_v62 = vpop.eup %2515 }
 0xa07   :  { %v1773_v2 = vpack.c.bf16 %v2516_v62, %v2514_v57  ;;  %v1759_v3 = vsel %vm516_vm11, %v2516_v62, 0.0 }
 0xa08   :  { %1754 = vadd.xlane.f32.xlu0 %v1753_v0  ;;  %1757 = vadd.xlane.f32.xlu1 %v1756_v1 }
 0xa09   :  { %2376 = vmatmul.mubr.msk.bf16.gmra.mxu1 %vm516_vm11, %v1773_v2 }
 0xa0c   :  { %1760 = vadd.xlane.f32.xlu0 %v1759_v3 }
 0xa85   :  { %v1746_v4 = vpop.xlane.xlu1 %1745 }
 0xa86   :  { %2517 = vrcp.f32 %v1746_v4 }
 0xa89   :  { %v1749_v45 = vpop.xlane.xlu0 %1748  ;;  %v1740_v32 = vpop.xlane.xlu1 %1739 }
 0xa8a   :  { %2519 = vrcp.f32 %v1740_v32 }
 0xa8b   :  { %2521 = vrcp.f32 %v1749_v45 }
 0xa8d   :  { %v1743_v5 = vpop.xlane.xlu0 %1742  ;;  %v1752_v6 = vpop.xlane.xlu1 %1751 }
 0xa8e   :  { %2523 = vrcp.f32 %v1743_v5 }
 0xa91   :  { %v1755_v7 = vpop.xlane.xlu0 %1754  ;;  %v1758_v8 = vpop.xlane.xlu1 %1757 }
 0xa92   :  { %2525 = vrcp.f32 %v1758_v8 }
 0xa93   :  { %2527 = vrcp.f32 %v1752_v6  ;;  %v2518_v10 = vpop.eup %2517 }
 0xa95   :  { %v1761_v9 = vpop.xlane.xlu0 %1760 }
 0xa96   :  { %2529 = vrcp.f32 %v1761_v9 }
 0xa97   :  { %2531 = vrcp.f32 %v1755_v7  ;;  %v2520_v63 = vpop.eup %2519 }
 0xa98   :  { %v2522_v20 = vpop.eup %2521 }
 0xa9b   :  { %v2524_v23 = vpop.eup %2523 }
 0xa9f   :  { %v2526_v27 = vpop.eup %2525 }
 0xaa0   :  { %v2528_v18 = vpop.eup %2527 }
 0xaa3   :  { %v2530_v38 = vpop.eup %2529 }
 0xaa4   :  { %v2532_v44 = vpop.eup %2531 }
 0xac1   :  { %v2373_v12 = vpop.f32.mrf.mxu1 }
 0xac2   :  { %v1853_v29 = vmul.f32 %v2518_v10, %v2373_v12 }
 0xac3   :  { %v1820_v60 = vpop.f32.mrf.mxu1 }
 0xac4   :  { %v1869_v15 = vadd.f32 %v2039_v13, %v1853_v29  ;;  %v1851_v17 = vmul.f32 %v2520_v63, %v1820_v60 }
 0xac5   :  { %v2374_v21 = vpop.f32.mrf.mxu1 }
 0xac6   :  { %v1877_v22 = vmax.f32 %v1869_v15, 0.0  ;;  %v1867_v19 = vadd.f32 %v2039_v13, %v1851_v17  ;;  %v1854_v14 = vmul.f32 %v2522_v20, %v2374_v21 }
 0xac7   :  { %v1823_v24 = vpop.f32.mrf.mxu1 }
 0xac8   :  { %1885 = vst [vmem:[#allocation7 + $0x10] sm:$0xff] %v1877_v22  ;;  %v1875_v16 = vmax.f32 %v1867_v19, 0.0  ;;  %v1870_v25 = vadd.f32 %v2039_v13, %v1854_v14  ;;  %v1852_v26 = vmul.f32 %v2524_v23, %v1823_v24 }
 0xac9   :  { %v2377_v31 = vpop.f32.mrf.mxu1 }
 0xaca   :  { %1883 = vst [vmem:[#allocation7] sm:$0xff] %v1875_v16  ;;  %v1878_v33 = vmax.f32 %v1870_v25, 0.0  ;;  %v1868_v34 = vadd.f32 %v2039_v13, %v1852_v26  ;;  %v1857_v28 = vmul.f32 %v2526_v27, %v2377_v31 }
 0xacb   :  { %v1836_v35 = vpop.f32.mrf.mxu1 }
 0xacc   :  { %1886 = vst [vmem:[#allocation7 + $0x18] sm:$0xff] %v1878_v33  ;;  %v1876_v30 = vmax.f32 %v1868_v34, 0.0  ;;  %v1873_v36 = vadd.f32 %v2039_v13, %v1857_v28  ;;  %v1855_v37 = vmul.f32 %v2528_v18, %v1836_v35 }
 0xacd   :  { %v2378_v40 = vpop.f32.mrf.mxu1 }
 0xace   :  { %1884 = vst [vmem:[#allocation7 + $0x8] sm:$0xff] %v1876_v30  ;;  %v1881_v41 = vmax.f32 %v1873_v36, 0.0  ;;  %v1871_v42 = vadd.f32 %v2039_v13, %v1855_v37  ;;  %v1858_v43 = vmul.f32 %v2530_v38, %v2378_v40 }
 0xacf   :  { %v1839_v46 = vpop.f32.mrf.mxu1 }
 0xad0   :  { %1889 = vst [vmem:[#allocation7 + $0x30] sm:$0xff] %v1881_v41  ;;  %v1879_v47 = vmax.f32 %v1871_v42, 0.0  ;;  %v1874_v48 = vadd.f32 %v2039_v13, %v1858_v43  ;;  %v1856_v49 = vmul.f32 %v2532_v44, %v1839_v46 }
 0xad2   :  { %1887 = vst [vmem:[#allocation7 + $0x20] sm:$0xff] %v1879_v47  ;;  %v1882_v50 = vmax.f32 %v1874_v48, 0.0  ;;  %v1872_v51 = vadd.f32 %v2039_v13, %v1856_v49 }
 0xad4   :  { %1890 = vst [vmem:[#allocation7 + $0x38] sm:$0xff] %v1882_v50  ;;  %v1880_v53 = vmax.f32 %v1872_v51, 0.0 }
 0xad6   :  { %1888 = vst [vmem:[#allocation7 + $0x28] sm:$0xff] %v1880_v53 }
 0xad7   :  { %2584 = shalt.err (!%p2581_p0)
}
 0xad8   :  { %1902 = dma.vmem_to_hbm [thread:$0]  %s1897_s16, 1024, %s3019_s6, [#allocation4], %s2600_s24, %s2600_s24, %s2601_s25  }
 0xad9   :  { %2597 = dma.done.wait [#allocation4], 1024  }
 0xada   :  { %2598 = vsyncadd [#allocation4], 4294966272 }
 0xadb   :  { %1906 = vsyncpa [#allocation3], 1 }
 0xadc   :  { %1907 = vsyncpa [#allocation6], 1 }
 0xadd   :  { %1908 = vsyncpa [#allocation4], 1 }

</bundles_post_ra>
